<compile_context>
chip_gen: v6e
topology: v6e:2x2x1
jax: 0.10.0
libtpu: 0.0.40
codegen_flags: <defaults>
</compile_context>

<pallas_src>
import jax
import jax.numpy as jnp
from jax import lax
from jax.experimental import pallas as pl
from jax.experimental.pallas import tpu as pltpu


Z_SIZE = 32
HIDDEN = (512, 512, 128, 64, 1)
DEFAULT_TB = 1024        # max batch tile (rows fed to the MXU per grid step)


def _round_up(x, m):
    return ((x + m - 1) // m) * m


def _choose_tiling(batch):
    """Pick (tb, b_pad).

    * tb is a multiple of 128 so the lane-packed logit output block is
      lane-dense (unmasked vector stores) for every tile.
    * The grid always has >= 2 steps so v7x's two TensorCores both get work
      (the batch axis is marked "parallel").
    * tb is capped at DEFAULT_TB; 1024 rows already amortize the per-step
      grid overhead and keep the [tb,512] intermediates small in VMEM
      (re-derived for v7x's 64 MiB physical VMEM as well).
    """
    tb = min(DEFAULT_TB, _round_up(max(1, (batch + 1) // 2), 128))
    b_pad = max(_round_up(batch, tb), 2 * tb)
    return tb, b_pad


def _mlp_kernel(x_ref,
                w1_ref, b1_ref,
                w2_ref, b2_ref,
                w3_ref, b3_ref,
                w4_ref, b4_ref,
                w5_ref, b5_ref,
                out_ref):
    """Fused 5-layer MLP for one batch tile. Weights stay resident in VMEM."""
    # bf16 matmul inputs, f32 accumulation, f32 elementwise (bias + ReLU).
    h = x_ref[...].astype(jnp.bfloat16)

    h = jnp.dot(h, w1_ref[...], preferred_element_type=jnp.float32) + b1_ref[...]
    h = jnp.maximum(h, 0.0).astype(jnp.bfloat16)

    h = jnp.dot(h, w2_ref[...], preferred_element_type=jnp.float32) + b2_ref[...]
    h = jnp.maximum(h, 0.0).astype(jnp.bfloat16)

    h = jnp.dot(h, w3_ref[...], preferred_element_type=jnp.float32) + b3_ref[...]
    h = jnp.maximum(h, 0.0).astype(jnp.bfloat16)

    h = jnp.dot(h, w4_ref[...], preferred_element_type=jnp.float32) + b4_ref[...]
    h = jnp.maximum(h, 0.0).astype(jnp.bfloat16)

    # Lane-packed final layer: contract the 64-wide feature dim of both
    # operands -> [1, tb], logits lie along lanes in batch order.
    logit = lax.dot_general(
        w5_ref[...], h,                               # [1,64] x [tb,64] -> [1,tb]
        dimension_numbers=(((1,), (1,)), ((), ())),
        preferred_element_type=jnp.float32,
    ) + b5_ref[...]                                   # [1,1] broadcasts over lanes
    out_ref[...] = logit.astype(out_ref.dtype)


def _prepare_kernel_params(params):
    """bf16 weights; the last layer is transposed to [1, 64] so the kernel can
    emit lane-packed logits. Biases stay f32 ([1, fout]; last one is [1, 1])."""
    (w1, b1), (w2, b2), (w3, b3), (w4, b4), (w5, b5) = params
    ws = [w.astype(jnp.bfloat16) for w in (w1, w2, w3, w4)]
    bs = [b.astype(jnp.float32) for b in (b1, b2, b3, b4)]
    w5t = w5.T.astype(jnp.bfloat16)          # [1, 64]
    b5 = b5.astype(jnp.float32)              # [1, 1]
    return list(zip(ws, bs)) + [(w5t, b5)]


@jax.jit
def discriminator_forward(x, params):
    """x: [B, z_size] float32. params: list of (W, b) with W: [in,out], b: [1,out]."""
    B, zin = x.shape
    assert zin == Z_SIZE

    tb, b_pad = _choose_tiling(B)
    if b_pad != B:
        # TODO(synk): for very large, awkward B a separate tail kernel would
        # avoid this full-array pad copy; negligible for typical batches.
        x = jnp.pad(x, ((0, b_pad - B), (0, 0)))

    kparams = _prepare_kernel_params(params)
    grid = (b_pad // tb,)

    # x is tiled over batch; all weights/biases use a constant block index
    # (full-array block, DMA'd once and kept resident across grid steps).
    in_specs = [pl.BlockSpec((tb, Z_SIZE), lambda i: (i, 0))]
    flat_params = []
    weight_bytes = 0
    flops = 0
    for (w, b) in kparams:
        in_specs.append(pl.BlockSpec(w.shape, lambda i: (0, 0)))
        in_specs.append(pl.BlockSpec(b.shape, lambda i: (0, 0)))
        flat_params.extend([w, b])
        weight_bytes += w.size * w.dtype.itemsize + b.size * b.dtype.itemsize
        flops += 2 * b_pad * w.shape[0] * w.shape[1]

    cost = pl.CostEstimate(
        flops=flops,
        transcendentals=0,
        bytes_accessed=weight_bytes + b_pad * Z_SIZE * 4 + b_pad * 4,
    )

    out = pl.pallas_call(
        _mlp_kernel,
        out_shape=jax.ShapeDtypeStruct((1, b_pad), jnp.float32),
        grid_spec=pltpu.PrefetchScalarGridSpec(
            num_scalar_prefetch=0,
            grid=grid,
            in_specs=in_specs,
            # Lane-packed logits: block i covers lanes [i*tb, (i+1)*tb).
            out_specs=pl.BlockSpec((1, tb), lambda i: (0, i)),
        ),
        compiler_params=pltpu.CompilerParams(
            dimension_semantics=("parallel",),
            # ~10 MiB working set at tb=1024; 32 MiB is above v5e's ~16 MiB
            # scoped default and well under v7x's 64 MiB physical VMEM.
            vmem_limit_bytes=32 * 1024 * 1024,
        ),
        cost_estimate=cost,
    )(x, *flat_params)

    # Strip batch padding; restore the [B, 1] logit shape.
    return out[0, :B].reshape(B, 1)


def init_params(key, z_size=Z_SIZE, hidden=HIDDEN):
    """Deterministic init mimicking PyTorch nn.Linear default (U(-1/sqrt(in), 1/sqrt(in)))."""
    params = []
    dims = (z_size,) + hidden
    for i in range(len(hidden)):
        fin, fout = dims[i], dims[i + 1]
        key, kw, kb = jax.random.split(key, 3)
        bound = 1.0 / (fin ** 0.5)
        w = jax.random.uniform(kw, (fin, fout), jnp.float32, -bound, bound)
        b = jax.random.uniform(kb, (1, fout), jnp.float32, -bound, bound)
        params.append((w, b))
    return params


def _reference_forward_bf16(x, params):
    """Mirrors the kernel numerics: bf16 matmul inputs, f32 accumulate/elementwise."""
    h = x
    for li, (w, b) in enumerate(params):
        h = jnp.dot(h.astype(jnp.bfloat16), w.astype(jnp.bfloat16),
                    preferred_element_type=jnp.float32) + b
        if li < len(params) - 1:
            h = jnp.maximum(h, 0.0)
    return h


def _reference_forward_f32(x, params):
    h = x
    for li, (w, b) in enumerate(params):
        h = h @ w + b
        if li < len(params) - 1:
            h = jnp.maximum(h, 0.0)
    return h


if __name__ == "__main__":
    key = jax.random.PRNGKey(0)
    kp, kx = jax.random.split(key)

    params = init_params(kp)
    batch = 2
    x = jax.random.normal(kx, (batch, Z_SIZE), jnp.float32)

    logit = discriminator_forward(x, params)
    jax.block_until_ready(logit)
    assert logit.shape == (batch, 1), logit.shape

    # Exact-numerics reference (bf16 matmul inputs, f32 accumulation).
    ref_bf16 = _reference_forward_bf16(x, params)
    assert jnp.allclose(logit, ref_bf16, atol=1e-3, rtol=1e-3), (logit, ref_bf16)

    # Sanity check vs. full-f32 math (looser tolerance for bf16 weight rounding).
    ref_f32 = _reference_forward_f32(x, params)
    assert jnp.allclose(logit, ref_f32, atol=5e-2, rtol=5e-2), (logit, ref_f32)

    print("KERNEL_OK")
</pallas_src>

<mosaic_0001>
module attributes {stable_mosaic.version = 11 : i64} {
  func.func @_mlp_kernel(%arg0: i32, %arg1: memref<128x32xf32, #tpu.memory_space<vmem>>, %arg2: memref<32x512xbf16, #tpu.memory_space<vmem>>, %arg3: memref<1x512xf32, #tpu.memory_space<vmem>>, %arg4: memref<512x512xbf16, #tpu.memory_space<vmem>>, %arg5: memref<1x512xf32, #tpu.memory_space<vmem>>, %arg6: memref<512x128xbf16, #tpu.memory_space<vmem>>, %arg7: memref<1x128xf32, #tpu.memory_space<vmem>>, %arg8: memref<128x64xbf16, #tpu.memory_space<vmem>>, %arg9: memref<1x64xf32, #tpu.memory_space<vmem>>, %arg10: memref<1x64xbf16, #tpu.memory_space<vmem>>, %arg11: memref<1x1xf32, #tpu.memory_space<vmem>>, %arg12: memref<1x128xf32, #tpu.memory_space<vmem>>) attributes {dimension_semantics = [#tpu.dimension_semantics<parallel>], iteration_bounds = array<i64: 2>, scalar_prefetch = 0 : i64, scratch_operands = 0 : i64, tpu.core_type = #tpu.core_type<tc>, window_params = [{transform_indices = @transform_0, window_bounds = array<i64: 128, 32>}, {pipeline_mode = #tpu.pipeline_mode<synchronous>, transform_indices = @transform_1, window_bounds = array<i64: 32, 512>}, {pipeline_mode = #tpu.pipeline_mode<synchronous>, transform_indices = @transform_2, window_bounds = array<i64: 1, 512>}, {pipeline_mode = #tpu.pipeline_mode<synchronous>, transform_indices = @transform_3, window_bounds = array<i64: 512, 512>}, {pipeline_mode = #tpu.pipeline_mode<synchronous>, transform_indices = @transform_4, window_bounds = array<i64: 1, 512>}, {pipeline_mode = #tpu.pipeline_mode<synchronous>, transform_indices = @transform_5, window_bounds = array<i64: 512, 128>}, {pipeline_mode = #tpu.pipeline_mode<synchronous>, transform_indices = @transform_6, window_bounds = array<i64: 1, 128>}, {pipeline_mode = #tpu.pipeline_mode<synchronous>, transform_indices = @transform_7, window_bounds = array<i64: 128, 64>}, {pipeline_mode = #tpu.pipeline_mode<synchronous>, transform_indices = @transform_8, window_bounds = array<i64: 1, 64>}, {pipeline_mode = #tpu.pipeline_mode<synchronous>, transform_indices = @transform_9, window_bounds = array<i64: 1, 64>}, {pipeline_mode = #tpu.pipeline_mode<synchronous>, transform_indices = @transform_10, window_bounds = array<i64: 1, 1>}, {transform_indices = @transform_11, window_bounds = array<i64: 1, 128>}]} {
    %c0 = arith.constant 0 : index
    %c0_0 = arith.constant 0 : index
    %0 = vector.load %arg1[%c0, %c0_0] : memref<128x32xf32, #tpu.memory_space<vmem>>, vector<128x32xf32>
    %1 = arith.truncf %0 : vector<128x32xf32> to vector<128x32xbf16>
    %c0_1 = arith.constant 0 : index
    %c0_2 = arith.constant 0 : index
    %2 = vector.load %arg2[%c0_1, %c0_2] : memref<32x512xbf16, #tpu.memory_space<vmem>>, vector<32x512xbf16>
    %cst = arith.constant dense<0.000000e+00> : vector<128x512xf32>
    %3 = tpu.matmul %1, %2, %cst {dimension_numbers = #tpu.dot_dimension_numbers<[1], [0], [0], [1], [0, 0, 1, 1], [], []>} : vector<128x32xbf16>, vector<32x512xbf16>, vector<128x512xf32> -> vector<128x512xf32>
    %c0_3 = arith.constant 0 : index
    %c0_4 = arith.constant 0 : index
    %4 = vector.load %arg3[%c0_3, %c0_4] : memref<1x512xf32, #tpu.memory_space<vmem>>, vector<1x512xf32>
    %5 = vector.broadcast %4 : vector<1x512xf32> to vector<128x512xf32>
    %6 = arith.addf %3, %5 : vector<128x512xf32>
    %cst_5 = arith.constant 0.000000e+00 : f32
    %7 = vector.broadcast %cst_5 : f32 to vector<128x512xf32>
    %8 = arith.maximumf %6, %7 : vector<128x512xf32>
    %9 = arith.truncf %8 : vector<128x512xf32> to vector<128x512xbf16>
    %c0_6 = arith.constant 0 : index
    %c0_7 = arith.constant 0 : index
    %10 = vector.load %arg4[%c0_6, %c0_7] : memref<512x512xbf16, #tpu.memory_space<vmem>>, vector<512x512xbf16>
    %cst_8 = arith.constant dense<0.000000e+00> : vector<128x512xf32>
    %11 = tpu.matmul %9, %10, %cst_8 {dimension_numbers = #tpu.dot_dimension_numbers<[1], [0], [0], [1], [0, 0, 1, 1], [], []>} : vector<128x512xbf16>, vector<512x512xbf16>, vector<128x512xf32> -> vector<128x512xf32>
    %c0_9 = arith.constant 0 : index
    %c0_10 = arith.constant 0 : index
    %12 = vector.load %arg5[%c0_9, %c0_10] : memref<1x512xf32, #tpu.memory_space<vmem>>, vector<1x512xf32>
    %13 = vector.broadcast %12 : vector<1x512xf32> to vector<128x512xf32>
    %14 = arith.addf %11, %13 : vector<128x512xf32>
    %cst_11 = arith.constant 0.000000e+00 : f32
    %15 = vector.broadcast %cst_11 : f32 to vector<128x512xf32>
    %16 = arith.maximumf %14, %15 : vector<128x512xf32>
    %17 = arith.truncf %16 : vector<128x512xf32> to vector<128x512xbf16>
    %c0_12 = arith.constant 0 : index
    %c0_13 = arith.constant 0 : index
    %18 = vector.load %arg6[%c0_12, %c0_13] : memref<512x128xbf16, #tpu.memory_space<vmem>>, vector<512x128xbf16>
    %cst_14 = arith.constant dense<0.000000e+00> : vector<128x128xf32>
    %19 = tpu.matmul %17, %18, %cst_14 {dimension_numbers = #tpu.dot_dimension_numbers<[1], [0], [0], [1], [0, 0, 1, 1], [], []>} : vector<128x512xbf16>, vector<512x128xbf16>, vector<128x128xf32> -> vector<128x128xf32>
    %c0_15 = arith.constant 0 : index
    %c0_16 = arith.constant 0 : index
    %20 = vector.load %arg7[%c0_15, %c0_16] : memref<1x128xf32, #tpu.memory_space<vmem>>, vector<1x128xf32>
    %21 = vector.broadcast %20 : vector<1x128xf32> to vector<128x128xf32>
    %22 = arith.addf %19, %21 : vector<128x128xf32>
    %cst_17 = arith.constant 0.000000e+00 : f32
    %23 = vector.broadcast %cst_17 : f32 to vector<128x128xf32>
    %24 = arith.maximumf %22, %23 : vector<128x128xf32>
    %25 = arith.truncf %24 : vector<128x128xf32> to vector<128x128xbf16>
    %c0_18 = arith.constant 0 : index
    %c0_19 = arith.constant 0 : index
    %26 = vector.load %arg8[%c0_18, %c0_19] : memref<128x64xbf16, #tpu.memory_space<vmem>>, vector<128x64xbf16>
    %cst_20 = arith.constant dense<0.000000e+00> : vector<128x64xf32>
    %27 = tpu.matmul %25, %26, %cst_20 {dimension_numbers = #tpu.dot_dimension_numbers<[1], [0], [0], [1], [0, 0, 1, 1], [], []>} : vector<128x128xbf16>, vector<128x64xbf16>, vector<128x64xf32> -> vector<128x64xf32>
    %c0_21 = arith.constant 0 : index
    %c0_22 = arith.constant 0 : index
    %28 = vector.load %arg9[%c0_21, %c0_22] : memref<1x64xf32, #tpu.memory_space<vmem>>, vector<1x64xf32>
    %29 = vector.broadcast %28 : vector<1x64xf32> to vector<128x64xf32>
    %30 = arith.addf %27, %29 : vector<128x64xf32>
    %cst_23 = arith.constant 0.000000e+00 : f32
    %31 = vector.broadcast %cst_23 : f32 to vector<128x64xf32>
    %32 = arith.maximumf %30, %31 : vector<128x64xf32>
    %33 = arith.truncf %32 : vector<128x64xf32> to vector<128x64xbf16>
    %c0_24 = arith.constant 0 : index
    %c0_25 = arith.constant 0 : index
    %34 = vector.load %arg10[%c0_24, %c0_25] : memref<1x64xbf16, #tpu.memory_space<vmem>>, vector<1x64xbf16>
    %cst_26 = arith.constant dense<0.000000e+00> : vector<1x128xf32>
    %35 = tpu.matmul %34, %33, %cst_26 {dimension_numbers = #tpu.dot_dimension_numbers<[1], [1], [0], [0], [0, 0, 1, 0], [], []>} : vector<1x64xbf16>, vector<128x64xbf16>, vector<1x128xf32> -> vector<1x128xf32>
    %c0_27 = arith.constant 0 : index
    %c0_28 = arith.constant 0 : index
    %36 = vector.load %arg11[%c0_27, %c0_28] : memref<1x1xf32, #tpu.memory_space<vmem>>, vector<1x1xf32>
    %37 = vector.broadcast %36 : vector<1x1xf32> to vector<1x128xf32>
    %38 = arith.addf %35, %37 : vector<1x128xf32>
    %c0_29 = arith.constant 0 : index
    %c0_30 = arith.constant 0 : index
    %39 = vector.load %arg12[%c0_29, %c0_30] : memref<1x128xf32, #tpu.memory_space<vmem>>, vector<1x128xf32>
    tpu.vector_store %arg12[%c0_29, %c0_30], %38 {strides = array<i32>} : memref<1x128xf32, #tpu.memory_space<vmem>>, vector<1x128xf32>,
    return
  }
  func.func @transform_0(%arg0: i32) -> (i32, i32) {
    %c0_i32 = arith.constant 0 : i32
    %c0_i32_0 = arith.constant 0 : i32
    return %arg0, %c0_i32 : i32, i32
  }
  func.func @transform_1(%arg0: i32) -> (i32, i32) {
    %c0_i32 = arith.constant 0 : i32
    %c0_i32_0 = arith.constant 0 : i32
    %c0_i32_1 = arith.constant 0 : i32
    return %c0_i32, %c0_i32_0 : i32, i32
  }
  func.func @transform_2(%arg0: i32) -> (i32, i32) {
    %c0_i32 = arith.constant 0 : i32
    %c0_i32_0 = arith.constant 0 : i32
    %c0_i32_1 = arith.constant 0 : i32
    return %c0_i32, %c0_i32_0 : i32, i32
  }
  func.func @transform_3(%arg0: i32) -> (i32, i32) {
    %c0_i32 = arith.constant 0 : i32
    %c0_i32_0 = arith.constant 0 : i32
    %c0_i32_1 = arith.constant 0 : i32
    return %c0_i32, %c0_i32_0 : i32, i32
  }
  func.func @transform_4(%arg0: i32) -> (i32, i32) {
    %c0_i32 = arith.constant 0 : i32
    %c0_i32_0 = arith.constant 0 : i32
    %c0_i32_1 = arith.constant 0 : i32
    return %c0_i32, %c0_i32_0 : i32, i32
  }
  func.func @transform_5(%arg0: i32) -> (i32, i32) {
    %c0_i32 = arith.constant 0 : i32
    %c0_i32_0 = arith.constant 0 : i32
    %c0_i32_1 = arith.constant 0 : i32
    return %c0_i32, %c0_i32_0 : i32, i32
  }
  func.func @transform_6(%arg0: i32) -> (i32, i32) {
    %c0_i32 = arith.constant 0 : i32
    %c0_i32_0 = arith.constant 0 : i32
    %c0_i32_1 = arith.constant 0 : i32
    return %c0_i32, %c0_i32_0 : i32, i32
  }
  func.func @transform_7(%arg0: i32) -> (i32, i32) {
    %c0_i32 = arith.constant 0 : i32
    %c0_i32_0 = arith.constant 0 : i32
    %c0_i32_1 = arith.constant 0 : i32
    return %c0_i32, %c0_i32_0 : i32, i32
  }
  func.func @transform_8(%arg0: i32) -> (i32, i32) {
    %c0_i32 = arith.constant 0 : i32
    %c0_i32_0 = arith.constant 0 : i32
    %c0_i32_1 = arith.constant 0 : i32
    return %c0_i32, %c0_i32_0 : i32, i32
  }
  func.func @transform_9(%arg0: i32) -> (i32, i32) {
    %c0_i32 = arith.constant 0 : i32
    %c0_i32_0 = arith.constant 0 : i32
    %c0_i32_1 = arith.constant 0 : i32
    return %c0_i32, %c0_i32_0 : i32, i32
  }
  func.func @transform_10(%arg0: i32) -> (i32, i32) {
    %c0_i32 = arith.constant 0 : i32
    %c0_i32_0 = arith.constant 0 : i32
    %c0_i32_1 = arith.constant 0 : i32
    return %c0_i32, %c0_i32_0 : i32, i32
  }
  func.func @transform_11(%arg0: i32) -> (i32, i32) {
    %c0_i32 = arith.constant 0 : i32
    %c0_i32_0 = arith.constant 0 : i32
    return %c0_i32, %arg0 : i32, i32
  }
}

</mosaic_0001>

<bundles_post_ra>
// kernel: discriminator_forward.1
= control target key start
LH: loop header
LB: loop body
LE: loop exit
PB: predicated region body
PF: predicated region fallthrough
CT: control target
= control target key end

     0   :  { %s3706_s19 = smov 0   ;;  %s4695_s0 = inlined_call_operand.vmem [shape: f32[256,32], index: 0, kind: input, shape index: {}]   ;;  %s4696_s1 = inlined_call_operand.vmem [shape: bf16[32,512], index: 1, kind: input, shape index: {}]   ;;  %s4697_s2 = inlined_call_operand.vmem [shape: f32[1,512], index: 2, kind: input, shape index: {}]   ;;  %s4698_s3 = inlined_call_operand.vmem [shape: bf16[512,512], index: 3, kind: input, shape index: {}]   ;;  %s4699_s4 = inlined_call_operand.vmem [shape: f32[1,512], index: 4, kind: input, shape index: {}]   ;;  %s4700_s5 = inlined_call_operand.vmem [shape: bf16[512,128], index: 5, kind: input, shape index: {}]   ;;  %s4701_s6 = inlined_call_operand.vmem [shape: f32[1,128], index: 6, kind: input, shape index: {}]   ;;  %s4702_s7 = inlined_call_operand.vmem [shape: bf16[128,64], index: 7, kind: input, shape index: {}]   ;;  %s4703_s8 = inlined_call_operand.vmem [shape: f32[1,64], index: 8, kind: input, shape index: {}]   ;;  %s4704_s9 = inlined_call_operand.vmem [shape: bf16[1,64], index: 9, kind: input, shape index: {}]   ;;  %s4705_s10 = inlined_call_operand.<no memory space> [shape: f32[1,1], index: 10, kind: input, shape index: {}]   ;;  %s4706_s11 = inlined_call_operand.vmem [shape: f32[1,256], index: 11, kind: output, shape index: {}]  }
   0x1   :  { %v16_v0 = vstv %s4705_s10 }
   0x2   :  { %17 = vst [vmem:[#allocation2] sm:$0x1] %v16_v0 }
   0x3 LB: > { %s3712_s20 = sadd.s32 4294967295, %s3638_s19   ;;  %p2971_p0 = scmp.ge.s32.totalorder %s3638_s19, 1  ;;  %s3638_s19 = sphi %s3706_s19, %s23_s19  }
   0x4   : > { %p340_p1 = scmp.lt.s32.totalorder %s3638_s19, 3 }
   0x6   : > { %p341_p2 = pnand %p2971_p0, %p340_p1 }
   0x7   : > { %s2972_s10 = sshll.u32 (!%p341_p2), %s3712_s20, 4  ;;  %p384_p4 = scmp.lt.s32.totalorder (!%p341_p2), %s3712_s20, 1 }
   0x8   : > { %344 = sbr.rel (%p341_p2) target bundleno = 1230 (0x4ce), region = 64  ;;  %p379_p3 = scmp.lt.s32.totalorder (!%p341_p2), %s2972_s10, 31 }
   0xd   : > { %v3388_v1 = vld [vmem:[%s4696_s1 + $0x24] ss:$16 sps:$4 sm:$0xff]   ;;  %v3390_v2 = vld [vmem:[%s4696_s1 + $0x2c] ss:$16 sps:$4 sm:$0xff]   ;;  %v3640_v3 = vmov 0   ;;  %s4708_s10 = smov (!%p379_p3, %s2972_s10), 31 }
   0xe   : > { %539 = vmatprep.mubr.bf16.mxu0 %v3640_v3  ;;  %652 = vmatprep.mubr.bf16.mxu1 %v3640_v3  ;;  %v3392_v4 = vld [vmem:[%s4696_s1 + $0x20] ss:$16 sps:$4 sm:$0xff]   ;;  %v3393_v5 = vld [vmem:[%s4696_s1 + $0x28] ss:$16 sps:$4 sm:$0xff]   ;;  %v3394_v6 = vld [vmem:[%s4696_s1 + $0x4] ss:$16 sps:$4 sm:$0xff]  }
   0xf   : > { %519 = vmatprep.subr.bf16.mxu0 %v3388_v1  ;;  %3387 = vset.pattern.permute.xlu0 %v3640_v3  ;;  %v3396_v7 = vld [vmem:[%s4696_s1 + $0xc] ss:$16 sps:$4 sm:$0xff]   ;;  %v3398_v8 = vld [vmem:[%s4696_s1] ss:$16 sps:$4 sm:$0xff]   ;;  %v3399_v9 = vld [vmem:[%s4696_s1 + $0x8] ss:$16 sps:$4 sm:$0xff]  }
  0x10   : > { %632 = vmatprep.subr.bf16.mxu1 %v3390_v2  ;;  %520 = vmatpush1.bf16.msra.mxu0 %v3392_v4  ;;  %s2973_s18 = sshll.u32 %s4708_s10, 3  ;;  %v3402_v10 = vld [vmem:[%s4698_s3 + $0xe4] ss:$16 sps:$4 sm:$0xff]   ;;  %vm482_vm0 = vcmask 261120   ;;  %v3400_v14 = vld [vmem:[%s4698_s3 + $0xe0] ss:$16 sps:$4 sm:$0xff]  }
  0x11   : > { %633 = vmatpush1.bf16.msra.mxu1 %v3393_v5  ;;  %521 = vmatprep.subr.bf16.mxu0 %v3394_v6  ;;  %s3747_s23 = scalar_lea.vmem %s4695_s0, %s2973_s18  ;;  %v3403_v17 = vld [vmem:[%s4698_s3 + $0x2e0] ss:$16 sps:$4 sm:$0xff]   ;;  %v3405_v18 = vld [vmem:[%s4698_s3 + $0x2e4] ss:$16 sps:$4 sm:$0xff]   ;;  %vm3642_vm1 = vmmov 0   ;;  %vm2851_vm2 = vcmask 523264  }
  0x12   : > { %634 = vmatprep.subr.bf16.mxu1 %v3396_v7  ;;  %v388_v11 = vld [vmem:[%s3747_s23] sm:$0xff]  ;;  %v389_v12 = vld [vmem:[%s3747_s23 + $0x8] sm:$0xff]  ;;  %v390_v15 = vld [vmem:[%s3747_s23 + $0x10] sm:$0xff]  ;;  %s4710_s20 = smov (!%p384_p4, %s3712_s20), 1 }
  0x13   : > { %v404_v13 = vpack.c.bf16 %v389_v12, %v388_v11  ;;  %v391_v16 = vld [vmem:[%s3747_s23 + $0x18] sm:$0xff]  ;;  %v3406_v19 = vld [vmem:[%s4698_s3 + $0xc0] ss:$16 sps:$4 sm:$0xff]   ;;  %v3408_v20 = vld [vmem:[%s4698_s3 + $0xc4] ss:$16 sps:$4 sm:$0xff]   ;;  %s386_s15 = scalar_lea.vmem %s4706_s11, %s4710_s20 }
  0x14   : > { %522 = vmatpush1.bf16.msra.mxu0 %v3398_v8  ;;  %v405_v21 = vpack.c.bf16 %v391_v16, %v390_v15  ;;  %v3411_v22 = vld [vmem:[%s4698_s3 + $0x2c4] ss:$16 sps:$4 sm:$0xff]   ;;  %v3409_v23 = vld [vmem:[%s4698_s3 + $0x2c0] ss:$16 sps:$4 sm:$0xff]   ;;  %v393_v29 = vld [vmem:[%s3747_s23 + $0x28] sm:$0xff] }
  0x15   : > { %635 = vmatpush1.bf16.msra.mxu1 %v3399_v9  ;;  %1619 = vmatprep.subr.bf16.mxu0 %v3402_v10  ;;  %v3414_v24 = vld [vmem:[%s4698_s3 + $0xa4] ss:$16 sps:$4 sm:$0xff]   ;;  %v3412_v25 = vld [vmem:[%s4698_s3 + $0xa0] ss:$16 sps:$4 sm:$0xff]   ;;  %v395_v40 = vld [vmem:[%s3747_s23 + $0x38] sm:$0xff] }
  0x16   : > { %1732 = vmatprep.subr.bf16.mxu1 %v3405_v18  ;;  %v3417_v26 = vld [vmem:[%s4698_s3 + $0x2a4] ss:$16 sps:$4 sm:$0xff]   ;;  %v3415_v30 = vld [vmem:[%s4698_s3 + $0x2a0] ss:$16 sps:$4 sm:$0xff]   ;;  %v397_v51 = vld [vmem:[%s3747_s23 + $0x48] sm:$0xff] }
  0x17   : > { %2982 = vmatmul.mubr.msk.bf16.vlgmr.msra.gmra.mxu0 %vm482_vm0, %v404_v13  ;;  %v392_v27 = vld [vmem:[%s3747_s23 + $0x20] sm:$0xff]  ;;  %v394_v38 = vld [vmem:[%s3747_s23 + $0x30] sm:$0xff]  ;;  %v399_v61 = vld [vmem:[%s3747_s23 + $0x58] sm:$0xff] }
  0x18   : > { %2990 = vmatmul.mubr.msk.bf16.vlgmr.msra.gmra.mxu1 %vm482_vm0, %v404_v13  ;;  %549 = vmatprep.mubr.bf16.mxu0 %v3640_v3  ;;  %v3420_v28 = vld [vmem:[%s4698_s3 + $0x84] ss:$16 sps:$4 sm:$0xff]   ;;  %v3418_v31 = vld [vmem:[%s4698_s3 + $0x80] ss:$16 sps:$4 sm:$0xff]   ;;  %v406_v33 = vpack.c.bf16 %v393_v29, %v392_v27  ;;  %v407_v44 = vpack.c.bf16 %v395_v40, %v394_v38  ;;  %v401_v10 = vld [vmem:[%s3747_s23 + $0x68] sm:$0xff] }
  0x19   : > { %662 = vmatprep.mubr.bf16.mxu1 %v3640_v3  ;;  %1620 = vmatpush1.bf16.msra.mxu0 %v3400_v14  ;;  %v3423_v32 = vld [vmem:[%s4698_s3 + $0x284] ss:$16 sps:$4 sm:$0xff]   ;;  %v3421_v34 = vld [vmem:[%s4698_s3 + $0x280] ss:$16 sps:$4 sm:$0xff]  }
  0x1a   : > { %1733 = vmatpush1.bf16.msra.mxu1 %v3403_v17  ;;  %1621 = vmatprep.subr.bf16.mxu0 %v3408_v20  ;;  %v3426_v35 = vld [vmem:[%s4698_s3 + $0x64] ss:$16 sps:$4 sm:$0xff]   ;;  %v3424_v36 = vld [vmem:[%s4698_s3 + $0x60] ss:$16 sps:$4 sm:$0xff]   ;;  %v403_v20 = vld [vmem:[%s3747_s23 + $0x78] sm:$0xff] }
  0x1b   : > { %1734 = vmatprep.subr.bf16.mxu1 %v3411_v22  ;;  %v3429_v37 = vld [vmem:[%s4698_s3 + $0x264] ss:$16 sps:$4 sm:$0xff]   ;;  %v3427_v41 = vld [vmem:[%s4698_s3 + $0x260] ss:$16 sps:$4 sm:$0xff]  }
  0x1c   : > { %v3432_v39 = vld [vmem:[%s4698_s3 + $0x44] ss:$16 sps:$4 sm:$0xff]   ;;  %v3430_v42 = vld [vmem:[%s4698_s3 + $0x40] ss:$16 sps:$4 sm:$0xff]  }
  0x1d   : > { %1622 = vmatpush1.bf16.msra.mxu0 %v3406_v19  ;;  %v3435_v43 = vld [vmem:[%s4698_s3 + $0x244] ss:$16 sps:$4 sm:$0xff]   ;;  %v3433_v45 = vld [vmem:[%s4698_s3 + $0x240] ss:$16 sps:$4 sm:$0xff]  }
  0x1e   : > { %1735 = vmatpush1.bf16.msra.mxu1 %v3409_v23  ;;  %1623 = vmatprep.subr.bf16.mxu0 %v3414_v24  ;;  %v3438_v46 = vld [vmem:[%s4698_s3 + $0x24] ss:$16 sps:$4 sm:$0xff]   ;;  %v3436_v47 = vld [vmem:[%s4698_s3 + $0x20] ss:$16 sps:$4 sm:$0xff]  }
  0x1f   : > { %2983 = vmatmul.mubr.msk.bf16.gmra.mxu0 %vm482_vm0, %v405_v21  ;;  %1736 = vmatprep.subr.bf16.mxu1 %v3417_v26  ;;  %v3441_v48 = vld [vmem:[%s4698_s3 + $0x224] ss:$16 sps:$4 sm:$0xff]   ;;  %v3439_v52 = vld [vmem:[%s4698_s3 + $0x220] ss:$16 sps:$4 sm:$0xff]  }
  0x20   : > { %2991 = vmatmul.mubr.msk.bf16.gmra.mxu1 %vm482_vm0, %v405_v21  ;;  %559 = vmatprep.mubr.bf16.mxu0 %v3640_v3  ;;  %v396_v49 = vld [vmem:[%s3747_s23 + $0x40] sm:$0xff]  ;;  %v398_v58 = vld [vmem:[%s3747_s23 + $0x50] sm:$0xff] }
  0x21   : > { %672 = vmatprep.mubr.bf16.mxu1 %v3640_v3  ;;  %1624 = vmatpush1.bf16.msra.mxu0 %v3412_v25  ;;  %v3444_v50 = vld [vmem:[%s4698_s3 + $0x4] ss:$16 sps:$4 sm:$0xff]   ;;  %v3442_v53 = vld [vmem:[%s4698_s3] ss:$16 sps:$4 sm:$0xff]   ;;  %v408_v55 = vpack.c.bf16 %v397_v51, %v396_v49  ;;  %v409_v2 = vpack.c.bf16 %v399_v61, %v398_v58 }
  0x22   : > { %1625 = vmatprep.subr.bf16.mxu0 %v3420_v28  ;;  %1737 = vmatpush1.bf16.msra.mxu1 %v3415_v30  ;;  %v3447_v54 = vld [vmem:[%s4698_s3 + $0x204] ss:$16 sps:$4 sm:$0xff]   ;;  %v3445_v56 = vld [vmem:[%s4698_s3 + $0x200] ss:$16 sps:$4 sm:$0xff]  }
  0x23   : > { %1738 = vmatprep.subr.bf16.mxu1 %v3423_v32  ;;  %v3450_v57 = vld [vmem:[%s4698_s3 + $0x1e4] ss:$16 sps:$4 sm:$0xff]   ;;  %v3448_v59 = vld [vmem:[%s4698_s3 + $0x1e0] ss:$16 sps:$4 sm:$0xff]  }
  0x24   : > { %v3453_v60 = vld [vmem:[%s4698_s3 + $0x3e4] ss:$16 sps:$4 sm:$0xff]   ;;  %v3451_v63 = vld [vmem:[%s4698_s3 + $0x3e0] ss:$16 sps:$4 sm:$0xff]  }
  0x25   : > { %1626 = vmatpush1.bf16.msra.mxu0 %v3418_v31  ;;  %v3456_v62 = vld [vmem:[%s4698_s3 + $0x1c4] ss:$16 sps:$4 sm:$0xff]   ;;  %v3454_v0 = vld [vmem:[%s4698_s3 + $0x1c0] ss:$16 sps:$4 sm:$0xff]  }
  0x26   : > { %1739 = vmatpush1.bf16.msra.mxu1 %v3421_v34  ;;  %1627 = vmatprep.subr.bf16.mxu0 %v3426_v35  ;;  %v3459_v1 = vld [vmem:[%s4698_s3 + $0x3c4] ss:$16 sps:$4 sm:$0xff]   ;;  %v3457_v4 = vld [vmem:[%s4698_s3 + $0x3c0] ss:$16 sps:$4 sm:$0xff]   ;;  %v3498_v34 = vld [vmem:[%s4698_s3 + $0xec] ss:$16 sps:$4 sm:$0xff]  }
  0x27   : > { %2984 = vmatmul.mubr.msk.bf16.gmra.mxu0 %vm482_vm0, %v406_v33  ;;  %1740 = vmatprep.subr.bf16.mxu1 %v3429_v37  ;;  %v3462_v5 = vld [vmem:[%s4698_s3 + $0x1a4] ss:$16 sps:$4 sm:$0xff]   ;;  %v3460_v6 = vld [vmem:[%s4698_s3 + $0x1a0] ss:$16 sps:$4 sm:$0xff]   ;;  %v3501_v35 = vld [vmem:[%s4698_s3 + $0x2ec] ss:$16 sps:$4 sm:$0xff]  }
  0x28   : > { %2992 = vmatmul.mubr.msk.bf16.gmra.mxu1 %vm482_vm0, %v406_v33  ;;  %569 = vmatprep.mubr.bf16.mxu0 %v3640_v3  ;;  %v3465_v7 = vld [vmem:[%s4698_s3 + $0x3a4] ss:$16 sps:$4 sm:$0xff]   ;;  %v3463_v11 = vld [vmem:[%s4698_s3 + $0x3a0] ss:$16 sps:$4 sm:$0xff]  }
  0x29   : > { %682 = vmatprep.mubr.bf16.mxu1 %v3640_v3  ;;  %1628 = vmatpush1.bf16.msra.mxu0 %v3424_v36  ;;  %v3468_v8 = vld [vmem:[%s4698_s3 + $0x184] ss:$16 sps:$4 sm:$0xff]   ;;  %v3466_v12 = vld [vmem:[%s4698_s3 + $0x180] ss:$16 sps:$4 sm:$0xff]   ;;  %v422_v36 = vlaneseq }
  0x2a   : > { %1629 = vmatprep.subr.bf16.mxu0 %v3432_v39  ;;  %1741 = vmatpush1.bf16.msra.mxu1 %v3427_v41  ;;  %v400_v9 = vld [vmem:[%s3747_s23 + $0x60] sm:$0xff]  ;;  %v402_v19 = vld [vmem:[%s3747_s23 + $0x70] sm:$0xff] }
  0x2b   : > { %1742 = vmatprep.subr.bf16.mxu1 %v3435_v43  ;;  %v3471_v13 = vld [vmem:[%s4698_s3 + $0x384] ss:$16 sps:$4 sm:$0xff]   ;;  %v410_v14 = vpack.c.bf16 %v401_v10, %v400_v9  ;;  %v3469_v15 = vld [vmem:[%s4698_s3 + $0x380] ss:$16 sps:$4 sm:$0xff]   ;;  %v411_v22 = vpack.c.bf16 %v403_v20, %v402_v19  ;;  %v3993_v37 = vshrl.u32 %v422_v36, 7 }
  0x2c   : > { %v3474_v16 = vld [vmem:[%s4698_s3 + $0x164] ss:$16 sps:$4 sm:$0xff]   ;;  %v3472_v17 = vld [vmem:[%s4698_s3 + $0x160] ss:$16 sps:$4 sm:$0xff]   ;;  %v3504_v20 = vld [vmem:[%s4698_s3 + $0xcc] ss:$16 sps:$4 sm:$0xff]  }
  0x2d   : > { %1630 = vmatpush1.bf16.msra.mxu0 %v3430_v42  ;;  %v3477_v18 = vld [vmem:[%s4698_s3 + $0x364] ss:$16 sps:$4 sm:$0xff]   ;;  %v3475_v21 = vld [vmem:[%s4698_s3 + $0x360] ss:$16 sps:$4 sm:$0xff]   ;;  %v428_v38 = vsub.s32 1, %v3993_v37  ;;  %v436_v39 = vsub.s32 3, %v3993_v37 }
  0x2e   : > { %1743 = vmatpush1.bf16.msra.mxu1 %v3433_v45  ;;  %1631 = vmatprep.subr.bf16.mxu0 %v3438_v46  ;;  %v3480_v23 = vld [vmem:[%s4698_s3 + $0x144] ss:$16 sps:$4 sm:$0xff]   ;;  %v3481_v25 = vld [vmem:[%s4698_s3 + $0x340] ss:$16 sps:$4 sm:$0xff]   ;;  %v3998_v40 = vsub.s32 0, %v3993_v37  ;;  %v432_v41 = vsub.s32 2, %v3993_v37 }
  0x2f   : > { %2985 = vmatmul.mubr.msk.bf16.gmra.mxu0 %vm482_vm0, %v407_v44  ;;  %1744 = vmatprep.subr.bf16.mxu1 %v3441_v48  ;;  %v3483_v24 = vld [vmem:[%s4698_s3 + $0x344] ss:$16 sps:$4 sm:$0xff]   ;;  %v3484_v28 = vld [vmem:[%s4698_s3 + $0x120] ss:$16 sps:$4 sm:$0xff]  }
  0x30   : > { %2993 = vmatmul.mubr.msk.bf16.gmra.mxu1 %vm482_vm0, %v407_v44  ;;  %579 = vmatprep.mubr.bf16.mxu0 %v3640_v3  ;;  %v3486_v26 = vld [vmem:[%s4698_s3 + $0x124] ss:$16 sps:$4 sm:$0xff]   ;;  %v3487_v29 = vld [vmem:[%s4698_s3 + $0x320] ss:$16 sps:$4 sm:$0xff]  }
  0x31   : > { %692 = vmatprep.mubr.bf16.mxu1 %v3640_v3  ;;  %1632 = vmatpush1.bf16.msra.mxu0 %v3436_v47  ;;  %v3489_v27 = vld [vmem:[%s4698_s3 + $0x324] ss:$16 sps:$4 sm:$0xff]   ;;  %v3490_v32 = vld [vmem:[%s4698_s3 + $0x100] ss:$16 sps:$4 sm:$0xff]  }
  0x32   : > { %1633 = vmatprep.subr.bf16.mxu0 %v3444_v50  ;;  %1745 = vmatpush1.bf16.msra.mxu1 %v3439_v52  ;;  %v3492_v30 = vld [vmem:[%s4698_s3 + $0x104] ss:$16 sps:$4 sm:$0xff]   ;;  %v3493_v33 = vld [vmem:[%s4698_s3 + $0x300] ss:$16 sps:$4 sm:$0xff]  }
  0x33   : > { %1746 = vmatprep.subr.bf16.mxu1 %v3447_v54  ;;  %v3495_v31 = vld [vmem:[%s4698_s3 + $0x304] ss:$16 sps:$4 sm:$0xff]   ;;  %v420_v42 = vld [vmem:[%s4697_s2] sm:$0xf] }
  0x34   : > { %v4006_v45 = vrot.slane %v420_v42, %v428_v38  ;;  %v4010_v46 = vrot.slane %v420_v42, %v436_v39  ;;  %v4013_v47 = vrot.slane %v420_v42, %v3998_v40  ;;  %v4017_v48 = vrot.slane %v420_v42, %v432_v41  ;;  %v3510_v42 = vld [vmem:[%s4698_s3 + $0xac] ss:$16 sps:$4 sm:$0xff]  }
  0x35   : > { %1634 = vmatpush1.bf16.msra.mxu0 %v3442_v53 }
  0x36   : > { %1747 = vmatpush1.bf16.msra.mxu1 %v3445_v56  ;;  %1635 = vmatprep.subr.bf16.mxu0 %v3450_v57 }
  0x37   : > { %2986 = vmatmul.mubr.msk.bf16.gmra.mxu0 %vm482_vm0, %v408_v55  ;;  %1748 = vmatprep.subr.bf16.mxu1 %v3453_v60 }
  0x38   : > { %2994 = vmatmul.mubr.msk.bf16.gmra.mxu1 %vm482_vm0, %v408_v55  ;;  %589 = vmatprep.mubr.bf16.mxu0 %v3640_v3 }
  0x39   : > { %702 = vmatprep.mubr.bf16.mxu1 %v3640_v3  ;;  %1636 = vmatpush2.bf16.msra.mxu0 %v3448_v59 }
  0x3a   : > { %1637 = vmatprep.subr.bf16.mxu0 %v3456_v62  ;;  %1749 = vmatpush2.bf16.msra.mxu1 %v3451_v63 }
  0x3b   : > { %1750 = vmatprep.subr.bf16.mxu1 %v3459_v1 }
  0x3d   : > { %1638 = vmatpush2.bf16.msra.mxu0 %v3454_v0 }
  0x3e   : > { %1751 = vmatpush2.bf16.msra.mxu1 %v3457_v4  ;;  %1639 = vmatprep.subr.bf16.mxu0 %v3462_v5 }
  0x3f   : > { %2987 = vmatmul.mubr.msk.bf16.gmra.mxu0 %vm482_vm0, %v409_v2  ;;  %1752 = vmatprep.subr.bf16.mxu1 %v3465_v7 }
  0x40   : > { %2995 = vmatmul.mubr.msk.bf16.gmra.mxu1 %vm482_vm0, %v409_v2  ;;  %599 = vmatprep.mubr.bf16.mxu0 %v3640_v3 }
  0x41   : > { %712 = vmatprep.mubr.bf16.mxu1 %v3640_v3  ;;  %1640 = vmatpush2.bf16.msra.mxu0 %v3460_v6 }
  0x42   : > { %1641 = vmatprep.subr.bf16.mxu0 %v3468_v8  ;;  %1753 = vmatpush2.bf16.msra.mxu1 %v3463_v11 }
  0x43   : > { %1754 = vmatprep.subr.bf16.mxu1 %v3471_v13 }
  0x45   : > { %1642 = vmatpush2.bf16.msra.mxu0 %v3466_v12 }
  0x46   : > { %1755 = vmatpush2.bf16.msra.mxu1 %v3469_v15  ;;  %1643 = vmatprep.subr.bf16.mxu0 %v3474_v16  ;;  %v3499_v15 = vld [vmem:[%s4698_s3 + $0x2e8] ss:$16 sps:$4 sm:$0xff]  }
  0x47   : > { %2988 = vmatmul.mubr.msk.bf16.gmra.mxu0 %vm482_vm0, %v410_v14  ;;  %1756 = vmatprep.subr.bf16.mxu1 %v3477_v18 }
  0x48   : > { %2996 = vmatmul.mubr.msk.bf16.gmra.mxu1 %vm482_vm0, %v410_v14  ;;  %609 = vmatprep.mubr.bf16.mxu0 %v3640_v3  ;;  %v3496_v14 = vld [vmem:[%s4698_s3 + $0xe8] ss:$16 sps:$4 sm:$0xff]  }
  0x49   : > { %722 = vmatprep.mubr.bf16.mxu1 %v3640_v3  ;;  %1644 = vmatpush2.bf16.msra.mxu0 %v3472_v17  ;;  %v3478_v3 = vld [vmem:[%s4698_s3 + $0x140] ss:$16 sps:$4 sm:$0xff]  }
  0x4a   : > { %1757 = vmatpush2.bf16.msra.mxu1 %v3475_v21  ;;  %1645 = vmatprep.subr.bf16.mxu0 %v3480_v23  ;;  %v3507_v21 = vld [vmem:[%s4698_s3 + $0x2cc] ss:$16 sps:$4 sm:$0xff]  }
  0x4b   : > { %1758 = vmatprep.subr.bf16.mxu1 %v3483_v24 }
  0x4d   : > { %1646 = vmatpush2.bf16.msra.mxu0 %v3478_v3 }
  0x4e   : > { %1759 = vmatpush2.bf16.msra.mxu1 %v3481_v25  ;;  %1647 = vmatprep.subr.bf16.mxu0 %v3486_v26 }
  0x4f   : > { %2989 = vmatmul.mubr.msk.bf16.gmra.mxu0 %vm482_vm0, %v411_v22  ;;  %1760 = vmatprep.subr.bf16.mxu1 %v3489_v27 }
  0x50   : > { %2997 = vmatmul.mubr.msk.bf16.gmra.mxu1 %vm482_vm0, %v411_v22 }
  0x51   : > { %1648 = vmatpush2.bf16.msra.mxu0 %v3484_v28 }
  0x52   : > { %1761 = vmatpush2.bf16.msra.mxu1 %v3487_v29  ;;  %1649 = vmatprep.subr.bf16.mxu0 %v3492_v30 }
  0x53   : > { %1762 = vmatprep.subr.bf16.mxu1 %v3495_v31  ;;  %v3502_v31 = vld [vmem:[%s4698_s3 + $0xc8] ss:$16 sps:$4 sm:$0xff]  }
  0x55   : > { %1650 = vmatpush2.bf16.msra.mxu0 %v3490_v32  ;;  %v3505_v32 = vld [vmem:[%s4698_s3 + $0x2c8] ss:$16 sps:$4 sm:$0xff]  }
  0x56   : > { %1763 = vmatpush2.bf16.msra.mxu1 %v3493_v33  ;;  %1845 = vmatprep.subr.bf16.mxu0 %v3498_v34 }
  0x57   : > { %1958 = vmatprep.subr.bf16.mxu1 %v3501_v35 }
  0xd7   : > { %v541_v43 = vpop.f32.mrf.mxu0 }
  0xd8   : > { %v654_v44 = vpop.f32.mrf.mxu1  ;;  %v542_v57 = vadd.f32 %v541_v43, %v4013_v47  ;;  %v3513_v43 = vld [vmem:[%s4698_s3 + $0x2ac] ss:$16 sps:$4 sm:$0xff]  }
  0xd9   : > { %v543_v49 = vpop.f32.mrf.mxu0  ;;  %v655_v58 = vadd.f32 %v654_v44, %v4017_v48 }
  0xda   : > { %v656_v50 = vpop.f32.mrf.mxu1  ;;  %v544_v53 = vadd.f32 %v543_v49, %v4006_v45  ;;  %v733_v8 = vmax.f32 %v542_v57, 0.0  ;;  %v3508_v57 = vld [vmem:[%s4698_s3 + $0xa8] ss:$16 sps:$4 sm:$0xff]  }
  0xdb   : > { %v545_v51 = vpop.f32.mrf.mxu0  ;;  %v657_v54 = vadd.f32 %v656_v50, %v4010_v46  ;;  %v735_v9 = vmax.f32 %v655_v58, 0.0 }
  0xdc   : > { %v658_v52 = vpop.f32.mrf.mxu1  ;;  %v546_v55 = vadd.f32 %v545_v51, %v4013_v47  ;;  %v734_v4 = vmax.f32 %v544_v53, 0.0 }
  0xdd   : > { %v659_v56 = vadd.f32 %v658_v52, %v4017_v48  ;;  %v547_v59 = vpop.f32.mrf.mxu0  ;;  %v736_v5 = vmax.f32 %v657_v54, 0.0 }
  0xde   : > { %v660_v60 = vpop.f32.mrf.mxu1  ;;  %v548_v61 = vadd.f32 %v547_v59, %v4006_v45  ;;  %v737_v63 = vmax.f32 %v546_v55, 0.0 }
  0xdf   : > { %v661_v62 = vadd.f32 %v660_v60, %v4010_v46  ;;  %v739_v0 = vmax.f32 %v659_v56, 0.0  ;;  %v551_v1 = vpop.f32.mrf.mxu0 }
  0xe0   : > { %v664_v2 = vpop.f32.mrf.mxu1  ;;  %v738_v6 = vmax.f32 %v548_v61, 0.0  ;;  %v4037_v16 = vpack.c.bf16 %v737_v63, %v733_v8  ;;  %v552_v3 = vadd.f32 %v551_v1, %v4013_v47  ;;  %v3511_v63 = vld [vmem:[%s4698_s3 + $0x2a8] ss:$16 sps:$4 sm:$0xff]  }
  0xe1   : > { %v740_v7 = vmax.f32 %v661_v62, 0.0  ;;  %v553_v10 = vpop.f32.mrf.mxu0  ;;  %v4039_v17 = vpack.c.bf16 %v739_v0, %v735_v9  ;;  %v665_v25 = vadd.f32 %v664_v2, %v4017_v48  ;;  %v3516_v0 = vld [vmem:[%s4698_s3 + $0x8c] ss:$16 sps:$4 sm:$0xff]  }
  0xe2   : > { %v666_v11 = vpop.f32.mrf.mxu1  ;;  %v4027_v12 = vpack.c.bf16 %v738_v6, %v734_v4  ;;  %v554_v22 = vadd.f32 %v553_v10, %v4006_v45  ;;  %v741_v51 = vmax.f32 %v552_v3, 0.0  ;;  %v3519_v6 = vld [vmem:[%s4698_s3 + $0x28c] ss:$16 sps:$4 sm:$0xff]  }
  0xe3   : > { %v4029_v13 = vpack.c.bf16 %v740_v7, %v736_v5  ;;  %v555_v18 = vpop.f32.mrf.mxu0  ;;  %v667_v26 = vadd.f32 %v666_v11, %v4010_v46  ;;  %v743_v52 = vmax.f32 %v665_v25, 0.0 }
  0xe4   : > { %v668_v19 = vpop.f32.mrf.mxu1  ;;  %v556_v23 = vadd.f32 %v555_v18, %v4013_v47  ;;  %1651 = vmatprep.mubr.bf16.mxu0 %v4027_v12  ;;  %v742_v44 = vmax.f32 %v554_v22, 0.0  ;;  %v3517_v22 = vld [vmem:[%s4698_s3 + $0x288] ss:$16 sps:$4 sm:$0xff]  }
  0xe5   : > { %v669_v24 = vadd.f32 %v668_v19, %v4017_v48  ;;  %1764 = vmatprep.mubr.bf16.mxu1 %v4029_v13  ;;  %v557_v27 = vpop.f32.mrf.mxu0  ;;  %1652 = vmatmul.mubr.bf16.vlgmr.msra.gmra.mxu0 %v4037_v16  ;;  %v744_v53 = vmax.f32 %v667_v26, 0.0 }
  0xe6   : > { %v670_v28 = vpop.f32.mrf.mxu1  ;;  %1765 = vmatmul.mubr.bf16.vlgmr.msra.gmra.mxu1 %v4039_v17  ;;  %v558_v29 = vadd.f32 %v557_v27, %v4006_v45  ;;  %1846 = vmatpush1.bf16.msra.mxu0 %v3496_v14  ;;  %v745_v33 = vmax.f32 %v556_v23, 0.0  ;;  %v3522_v23 = vld [vmem:[%s4698_s3 + $0x6c] ss:$16 sps:$4 sm:$0xff]  }
  0xe7   : > { %v671_v30 = vadd.f32 %v670_v28, %v4010_v46  ;;  %1959 = vmatpush1.bf16.msra.mxu1 %v3499_v15  ;;  %v747_v34 = vmax.f32 %v669_v24, 0.0  ;;  %v561_v35 = vpop.f32.mrf.mxu0  ;;  %1847 = vmatprep.subr.bf16.mxu0 %v3504_v20  ;;  %v3514_v15 = vld [vmem:[%s4698_s3 + $0x88] ss:$16 sps:$4 sm:$0xff]  }
  0xe8   : > { %v674_v36 = vpop.f32.mrf.mxu1  ;;  %1960 = vmatprep.subr.bf16.mxu1 %v3507_v21  ;;  %v746_v49 = vmax.f32 %v558_v29, 0.0  ;;  %v4076_v58 = vpack.c.bf16 %v745_v33, %v741_v51  ;;  %v562_v7 = vadd.f32 %v561_v35, %v4013_v47 }
  0xe9   : > { %v748_v50 = vmax.f32 %v671_v30, 0.0  ;;  %v563_v54 = vpop.f32.mrf.mxu0  ;;  %v4078_v59 = vpack.c.bf16 %v747_v34, %v743_v52  ;;  %v675_v8 = vadd.f32 %v674_v36, %v4017_v48  ;;  %v3520_v34 = vld [vmem:[%s4698_s3 + $0x68] ss:$16 sps:$4 sm:$0xff]  }
  0xea   : > { %v676_v55 = vpop.f32.mrf.mxu1  ;;  %1848 = vmatpush1.bf16.msra.mxu0 %v3502_v31  ;;  %v4071_v56 = vpack.c.bf16 %v746_v49, %v742_v44  ;;  %v564_v1 = vadd.f32 %v563_v54, %v4006_v45  ;;  %v749_v27 = vmax.f32 %v562_v7, 0.0  ;;  %v3525_v31 = vld [vmem:[%s4698_s3 + $0x26c] ss:$16 sps:$4 sm:$0xff]   ;;  %v3523_v49 = vld [vmem:[%s4698_s3 + $0x268] ss:$16 sps:$4 sm:$0xff]  }
  0xeb   : > { %1961 = vmatpush1.bf16.msra.mxu1 %v3505_v32  ;;  %v565_v60 = vpop.f32.mrf.mxu0  ;;  %v4080_v62 = vpack.c.bf16 %v748_v50, %v744_v53  ;;  %1849 = vmatprep.subr.bf16.mxu0 %v3510_v42  ;;  %v677_v2 = vadd.f32 %v676_v55, %v4010_v46  ;;  %v751_v28 = vmax.f32 %v675_v8, 0.0  ;;  %v3528_v50 = vld [vmem:[%s4698_s3 + $0x4c] ss:$16 sps:$4 sm:$0xff]   ;;  %v3529_v7 = vld [vmem:[%s4698_s3 + $0x248] ss:$16 sps:$4 sm:$0xff]  }
  0xec   : > { %v678_v61 = vpop.f32.mrf.mxu1  ;;  %1962 = vmatprep.subr.bf16.mxu1 %v3513_v43  ;;  %v566_v4 = vadd.f32 %v565_v60, %v4013_v47  ;;  %1661 = vmatprep.mubr.bf16.mxu0 %v4071_v56  ;;  %v750_v24 = vmax.f32 %v564_v1, 0.0  ;;  %v3531_v54 = vld [vmem:[%s4698_s3 + $0x24c] ss:$16 sps:$4 sm:$0xff]   ;;  %v3526_v1 = vld [vmem:[%s4698_s3 + $0x48] ss:$16 sps:$4 sm:$0xff]  }
  0xed   : > { %v679_v5 = vadd.f32 %v678_v61, %v4017_v48  ;;  %1774 = vmatprep.mubr.bf16.mxu1 %v4080_v62  ;;  %v567_v9 = vpop.f32.mrf.mxu0  ;;  %1662 = vmatmul.mubr.bf16.gmra.mxu0 %v4076_v58  ;;  %v752_v3 = vmax.f32 %v677_v2, 0.0  ;;  %v3534_v8 = vld [vmem:[%s4698_s3 + $0x2c] ss:$16 sps:$4 sm:$0xff]  }
  0xee   : > { %v680_v10 = vpop.f32.mrf.mxu1  ;;  %v568_v11 = vadd.f32 %v567_v9, %v4006_v45  ;;  %1775 = vmatmul.mubr.bf16.gmra.mxu1 %v4078_v59  ;;  %1850 = vmatpush1.bf16.msra.mxu0 %v3508_v57  ;;  %v753_v18 = vmax.f32 %v566_v4, 0.0 }
  0xef   : > { %v681_v14 = vadd.f32 %v680_v10, %v4010_v46  ;;  %v755_v19 = vmax.f32 %v679_v5, 0.0  ;;  %1963 = vmatpush1.bf16.msra.mxu1 %v3511_v63  ;;  %v571_v20 = vpop.f32.mrf.mxu0  ;;  %1851 = vmatprep.subr.bf16.mxu0 %v3516_v0 }
  0xf0   : > { %v684_v21 = vpop.f32.mrf.mxu1  ;;  %v754_v25 = vmax.f32 %v568_v11, 0.0  ;;  %1964 = vmatprep.subr.bf16.mxu1 %v3519_v6  ;;  %v4122_v35 = vpack.c.bf16 %v753_v18, %v749_v27  ;;  %v572_v55 = vadd.f32 %v571_v20, %v4013_v47 }
  0xf1   : > { %v756_v26 = vmax.f32 %v681_v14, 0.0  ;;  %v573_v29 = vpop.f32.mrf.mxu0  ;;  %v4124_v36 = vpack.c.bf16 %v755_v19, %v751_v28  ;;  %v685_v57 = vadd.f32 %v684_v21, %v4017_v48  ;;  %v3537_v21 = vld [vmem:[%s4698_s3 + $0x22c] ss:$16 sps:$4 sm:$0xff]  }
  0xf2   : > { %v686_v30 = vpop.f32.mrf.mxu1  ;;  %1852 = vmatpush1.bf16.msra.mxu0 %v3514_v15  ;;  %v4115_v32 = vpack.c.bf16 %v754_v25, %v750_v24  ;;  %v574_v42 = vadd.f32 %v573_v29, %v4006_v45  ;;  %v757_v15 = vmax.f32 %v572_v55, 0.0  ;;  %v3532_v24 = vld [vmem:[%s4698_s3 + $0x28] ss:$16 sps:$4 sm:$0xff]  }
  0xf3   : > { %v4117_v33 = vpack.c.bf16 %v756_v26, %v752_v3  ;;  %1965 = vmatpush1.bf16.msra.mxu1 %v3517_v22  ;;  %v575_v43 = vpop.f32.mrf.mxu0  ;;  %1853 = vmatprep.subr.bf16.mxu0 %v3522_v23  ;;  %v687_v51 = vadd.f32 %v686_v30, %v4010_v46  ;;  %v759_v18 = vmax.f32 %v685_v57, 0.0  ;;  %v3535_v29 = vld [vmem:[%s4698_s3 + $0x228] ss:$16 sps:$4 sm:$0xff]   ;;  %v3540_v30 = vld [vmem:[%s4698_s3 + $0xc] ss:$16 sps:$4 sm:$0xff]  }
  0xf4   : > { %v688_v44 = vpop.f32.mrf.mxu1  ;;  %v576_v52 = vadd.f32 %v575_v43, %v4013_v47  ;;  %1671 = vmatprep.mubr.bf16.mxu0 %v4115_v32  ;;  %1966 = vmatprep.subr.bf16.mxu1 %v3525_v31  ;;  %v758_v9 = vmax.f32 %v574_v42, 0.0  ;;  %v3543_v43 = vld [vmem:[%s4698_s3 + $0x20c] ss:$16 sps:$4 sm:$0xff]  }
  0xf5   : > { %v689_v53 = vadd.f32 %v688_v44, %v4017_v48  ;;  %1784 = vmatprep.mubr.bf16.mxu1 %v4117_v33  ;;  %v577_v60 = vpop.f32.mrf.mxu0  ;;  %1672 = vmatmul.mubr.bf16.gmra.mxu0 %v4122_v35  ;;  %v760_v10 = vmax.f32 %v687_v51, 0.0 }
  0xf6   : > { %v690_v61 = vpop.f32.mrf.mxu1  ;;  %v578_v63 = vadd.f32 %v577_v60, %v4006_v45  ;;  %1785 = vmatmul.mubr.bf16.gmra.mxu1 %v4124_v36  ;;  %1854 = vmatpush1.bf16.msra.mxu0 %v3520_v34  ;;  %v761_v2 = vmax.f32 %v576_v52, 0.0 }
  0xf7   : > { %v691_v0 = vadd.f32 %v690_v61, %v4010_v46  ;;  %v763_v4 = vmax.f32 %v689_v53, 0.0  ;;  %1967 = vmatpush1.bf16.msra.mxu1 %v3523_v49  ;;  %v581_v5 = vpop.f32.mrf.mxu0  ;;  %1855 = vmatprep.subr.bf16.mxu0 %v3528_v50 }
  0xf8   : > { %v694_v6 = vpop.f32.mrf.mxu1  ;;  %v762_v11 = vmax.f32 %v578_v63, 0.0  ;;  %1968 = vmatprep.subr.bf16.mxu1 %v3531_v54  ;;  %v4166_v3 = vpack.c.bf16 %v761_v2, %v757_v15  ;;  %v582_v44 = vadd.f32 %v581_v5, %v4013_v47  ;;  %v3538_v54 = vld [vmem:[%s4698_s3 + $0x8] ss:$16 sps:$4 sm:$0xff]  }
  0xf9   : > { %v764_v14 = vmax.f32 %v691_v0, 0.0  ;;  %v583_v19 = vpop.f32.mrf.mxu0  ;;  %v4168_v25 = vpack.c.bf16 %v763_v4, %v759_v18  ;;  %v695_v49 = vadd.f32 %v694_v6, %v4017_v48  ;;  %v3541_v63 = vld [vmem:[%s4698_s3 + $0x208] ss:$16 sps:$4 sm:$0xff]   ;;  %v3546_v0 = vld [vmem:[%s4698_s3 + $0x1ec] ss:$16 sps:$4 sm:$0xff]  }
  0xfa   : > { %v696_v20 = vpop.f32.mrf.mxu1  ;;  %1856 = vmatpush1.bf16.msra.mxu0 %v3526_v1  ;;  %v4159_v22 = vpack.c.bf16 %v762_v11, %v758_v9  ;;  %v584_v26 = vadd.f32 %v583_v19, %v4006_v45  ;;  %v765_v6 = vmax.f32 %v582_v44, 0.0  ;;  %v3544_v15 = vld [vmem:[%s4698_s3 + $0x1e8] ss:$16 sps:$4 sm:$0xff]  }
  0xfb   : > { %v4161_v23 = vpack.c.bf16 %v764_v14, %v760_v10  ;;  %1969 = vmatpush1.bf16.msra.mxu1 %v3529_v7  ;;  %v585_v27 = vpop.f32.mrf.mxu0  ;;  %1857 = vmatprep.subr.bf16.mxu0 %v3534_v8  ;;  %v697_v31 = vadd.f32 %v696_v20, %v4010_v46  ;;  %v767_v7 = vmax.f32 %v695_v49, 0.0  ;;  %v3549_v10 = vld [vmem:[%s4698_s3 + $0x3ec] ss:$16 sps:$4 sm:$0xff]  }
  0xfc   : > { %v698_v28 = vpop.f32.mrf.mxu1  ;;  %v586_v34 = vadd.f32 %v585_v27, %v4013_v47  ;;  %1681 = vmatprep.mubr.bf16.mxu0 %v4159_v22  ;;  %1970 = vmatprep.subr.bf16.mxu1 %v3537_v21  ;;  %v766_v1 = vmax.f32 %v584_v26, 0.0  ;;  %v3547_v26 = vld [vmem:[%s4698_s3 + $0x3e8] ss:$16 sps:$4 sm:$0xff]   ;;  %v3552_v27 = vld [vmem:[%s4698_s3 + $0x1cc] ss:$16 sps:$4 sm:$0xff]  }
  0xfd   : > { %v699_v42 = vadd.f32 %v698_v28, %v4017_v48  ;;  %1794 = vmatprep.mubr.bf16.mxu1 %v4161_v23  ;;  %v587_v50 = vpop.f32.mrf.mxu0  ;;  %1682 = vmatmul.mubr.bf16.gmra.mxu0 %v4166_v3  ;;  %v768_v2 = vmax.f32 %v697_v31, 0.0  ;;  %v3555_v31 = vld [vmem:[%s4698_s3 + $0x3cc] ss:$16 sps:$4 sm:$0xff]  }
  0xfe   : > { %v700_v51 = vpop.f32.mrf.mxu1  ;;  %v588_v52 = vadd.f32 %v587_v50, %v4006_v45  ;;  %1795 = vmatmul.mubr.bf16.gmra.mxu1 %v4168_v25  ;;  %1858 = vmatpush1.bf16.msra.mxu0 %v3532_v24  ;;  %v769_v55 = vmax.f32 %v586_v34, 0.0 }
  0xff   : > { %v701_v53 = vadd.f32 %v700_v51, %v4010_v46  ;;  %v771_v57 = vmax.f32 %v699_v42, 0.0  ;;  %1971 = vmatpush1.bf16.msra.mxu1 %v3535_v29  ;;  %v591_v60 = vpop.f32.mrf.mxu0  ;;  %1859 = vmatprep.subr.bf16.mxu0 %v3540_v30  ;;  %v3550_v51 = vld [vmem:[%s4698_s3 + $0x1c8] ss:$16 sps:$4 sm:$0xff]  }
 0x100   : > { %v704_v61 = vpop.f32.mrf.mxu1  ;;  %v770_v4 = vmax.f32 %v588_v52, 0.0  ;;  %1972 = vmatprep.subr.bf16.mxu1 %v3543_v43  ;;  %v4210_v18 = vpack.c.bf16 %v769_v55, %v765_v6  ;;  %v592_v34 = vadd.f32 %v591_v60, %v4013_v47  ;;  %v3558_v60 = vld [vmem:[%s4698_s3 + $0x1ac] ss:$16 sps:$4 sm:$0xff]  }
 0x101   : > { %v772_v5 = vmax.f32 %v701_v53, 0.0  ;;  %v593_v8 = vpop.f32.mrf.mxu0  ;;  %v4212_v19 = vpack.c.bf16 %v771_v57, %v767_v7  ;;  %v705_v42 = vadd.f32 %v704_v61, %v4017_v48  ;;  %v3553_v57 = vld [vmem:[%s4698_s3 + $0x3c8] ss:$16 sps:$4 sm:$0xff]   ;;  %v3561_v7 = vld [vmem:[%s4698_s3 + $0x3ac] ss:$16 sps:$4 sm:$0xff]  }
 0x102   : > { %v706_v9 = vpop.f32.mrf.mxu1  ;;  %1860 = vmatpush1.bf16.msra.mxu0 %v3538_v54  ;;  %v4203_v11 = vpack.c.bf16 %v770_v4, %v766_v1  ;;  %v594_v20 = vadd.f32 %v593_v8, %v4006_v45 }
 0x103   : > { %v4205_v14 = vpack.c.bf16 %v772_v5, %v768_v2  ;;  %1973 = vmatpush1.bf16.msra.mxu1 %v3541_v63  ;;  %v595_v21 = vpop.f32.mrf.mxu0  ;;  %1861 = vmatprep.subr.bf16.mxu0 %v3546_v0  ;;  %v707_v28 = vadd.f32 %v706_v9, %v4010_v46  ;;  %v773_v2 = vmax.f32 %v592_v34, 0.0  ;;  %v775_v4 = vmax.f32 %v705_v42, 0.0  ;;  %v3567_v34 = vld [vmem:[%s4698_s3 + $0x38c] ss:$16 sps:$4 sm:$0xff]  }
 0x104   : > { %v708_v24 = vpop.f32.mrf.mxu1  ;;  %v596_v29 = vadd.f32 %v595_v21, %v4013_v47  ;;  %1691 = vmatprep.mubr.bf16.mxu0 %v4203_v11  ;;  %1974 = vmatprep.subr.bf16.mxu1 %v3549_v10  ;;  %v774_v61 = vmax.f32 %v594_v20, 0.0  ;;  %v3556_v10 = vld [vmem:[%s4698_s3 + $0x1a8] ss:$16 sps:$4 sm:$0xff]  }
 0x105   : > { %v709_v30 = vadd.f32 %v708_v24, %v4017_v48  ;;  %1804 = vmatprep.mubr.bf16.mxu1 %v4205_v14  ;;  %v597_v43 = vpop.f32.mrf.mxu0  ;;  %1692 = vmatmul.mubr.bf16.gmra.mxu0 %v4210_v18  ;;  %v776_v63 = vmax.f32 %v707_v28, 0.0  ;;  %v3564_v28 = vld [vmem:[%s4698_s3 + $0x18c] ss:$16 sps:$4 sm:$0xff]  }
 0x106   : > { %v710_v44 = vpop.f32.mrf.mxu1  ;;  %v598_v49 = vadd.f32 %v597_v43, %v4006_v45  ;;  %1805 = vmatmul.mubr.bf16.gmra.mxu1 %v4212_v19  ;;  %1862 = vmatpush2.bf16.msra.mxu0 %v3544_v15  ;;  %v777_v52 = vmax.f32 %v596_v29, 0.0 }
 0x107   : > { %v711_v50 = vadd.f32 %v710_v44, %v4010_v46  ;;  %v779_v53 = vmax.f32 %v709_v30, 0.0  ;;  %1975 = vmatpush2.bf16.msra.mxu1 %v3547_v26  ;;  %v601_v54 = vpop.f32.mrf.mxu0  ;;  %1863 = vmatprep.subr.bf16.mxu0 %v3552_v27  ;;  %v3559_v27 = vld [vmem:[%s4698_s3 + $0x3a8] ss:$16 sps:$4 sm:$0xff]  }
 0x108   : > { %v714_v55 = vpop.f32.mrf.mxu1  ;;  %v778_v0 = vmax.f32 %v598_v49, 0.0  ;;  %1976 = vmatprep.subr.bf16.mxu1 %v3555_v31  ;;  %v4254_v15 = vpack.c.bf16 %v777_v52, %v773_v2  ;;  %v602_v42 = vadd.f32 %v601_v54, %v4013_v47  ;;  %v3562_v52 = vld [vmem:[%s4698_s3 + $0x188] ss:$16 sps:$4 sm:$0xff]  }
 0x109   : > { %v780_v1 = vmax.f32 %v711_v50, 0.0  ;;  %v603_v5 = vpop.f32.mrf.mxu0  ;;  %v4256_v20 = vpack.c.bf16 %v779_v53, %v775_v4  ;;  %v715_v43 = vadd.f32 %v714_v55, %v4017_v48 }
 0x10a   : > { %v716_v6 = vpop.f32.mrf.mxu1  ;;  %1864 = vmatpush2.bf16.msra.mxu0 %v3550_v51  ;;  %v4249_v9 = vpack.c.bf16 %v778_v0, %v774_v61  ;;  %v604_v21 = vadd.f32 %v603_v5, %v4006_v45  ;;  %v3570_v61 = vld [vmem:[%s4698_s3 + $0x16c] ss:$16 sps:$4 sm:$0xff]   ;;  %v781_v4 = vmax.f32 %v602_v42, 0.0 }
 0x10b   : > { %v4247_v8 = vpack.c.bf16 %v780_v1, %v776_v63  ;;  %1977 = vmatpush2.bf16.msra.mxu1 %v3553_v57  ;;  %v605_v24 = vpop.f32.mrf.mxu0  ;;  %1865 = vmatprep.subr.bf16.mxu0 %v3558_v60  ;;  %v717_v29 = vadd.f32 %v716_v6, %v4010_v46  ;;  %v3565_v60 = vld [vmem:[%s4698_s3 + $0x388] ss:$16 sps:$4 sm:$0xff]   ;;  %v783_v5 = vmax.f32 %v715_v43, 0.0  ;;  %v3576_v42 = vld [vmem:[%s4698_s3 + $0x14c] ss:$16 sps:$4 sm:$0xff]  }
 0x10c   : > { %v718_v26 = vpop.f32.mrf.mxu1  ;;  %v606_v30 = vadd.f32 %v605_v24, %v4013_v47  ;;  %1701 = vmatprep.mubr.bf16.mxu0 %v4249_v9  ;;  %1978 = vmatprep.subr.bf16.mxu1 %v3561_v7  ;;  %v782_v63 = vmax.f32 %v604_v21, 0.0  ;;  %v3568_v21 = vld [vmem:[%s4698_s3 + $0x168] ss:$16 sps:$4 sm:$0xff]  }
 0x10d   : > { %v719_v31 = vadd.f32 %v718_v26, %v4017_v48  ;;  %1814 = vmatprep.mubr.bf16.mxu1 %v4247_v8  ;;  %v607_v44 = vpop.f32.mrf.mxu0  ;;  %1702 = vmatmul.mubr.bf16.gmra.mxu0 %v4254_v15  ;;  %v784_v0 = vmax.f32 %v717_v29, 0.0 }
 0x10e   : > { %v720_v49 = vpop.f32.mrf.mxu1  ;;  %v608_v50 = vadd.f32 %v607_v44, %v4006_v45  ;;  %1815 = vmatmul.mubr.bf16.gmra.mxu1 %v4256_v20  ;;  %1866 = vmatpush2.bf16.msra.mxu0 %v3556_v10  ;;  %v785_v53 = vmax.f32 %v606_v30, 0.0  ;;  %v3573_v10 = vld [vmem:[%s4698_s3 + $0x36c] ss:$16 sps:$4 sm:$0xff]  }
 0x10f   : > { %v721_v51 = vadd.f32 %v720_v49, %v4010_v46  ;;  %v787_v54 = vmax.f32 %v719_v31, 0.0  ;;  %1979 = vmatpush2.bf16.msra.mxu1 %v3559_v27  ;;  %v611_v55 = vpop.f32.mrf.mxu0  ;;  %1867 = vmatprep.subr.bf16.mxu0 %v3564_v28 }
 0x110   : > { %v724_v57 = vpop.f32.mrf.mxu1  ;;  %v786_v1 = vmax.f32 %v608_v50, 0.0  ;;  %1980 = vmatprep.subr.bf16.mxu1 %v3567_v34  ;;  %v4298_v27 = vpack.c.bf16 %v785_v53, %v781_v4  ;;  %v3571_v34 = vld [vmem:[%s4698_s3 + $0x368] ss:$16 sps:$4 sm:$0xff]   ;;  %v3579_v50 = vld [vmem:[%s4698_s3 + $0x34c] ss:$16 sps:$4 sm:$0xff]  }
 0x111   : > { %v788_v2 = vmax.f32 %v721_v51, 0.0  ;;  %v613_v6 = vpop.f32.mrf.mxu0  ;;  %v4300_v28 = vpack.c.bf16 %v787_v54, %v783_v5  ;;  %v612_v51 = vadd.f32 %v611_v55, %v4013_v47  ;;  %v725_v54 = vadd.f32 %v724_v57, %v4017_v48  ;;  %v3577_v55 = vld [vmem:[%s4698_s3 + $0x348] ss:$16 sps:$4 sm:$0xff]   ;;  %v3585_v4 = vld [vmem:[%s4698_s3 + $0x32c] ss:$16 sps:$4 sm:$0xff]  }
 0x112   : > { %v726_v7 = vpop.f32.mrf.mxu1  ;;  %1868 = vmatpush2.bf16.msra.mxu0 %v3562_v52  ;;  %v4293_v26 = vpack.c.bf16 %v786_v1, %v782_v63  ;;  %v614_v29 = vadd.f32 %v613_v6, %v4006_v45  ;;  %v3574_v63 = vld [vmem:[%s4698_s3 + $0x148] ss:$16 sps:$4 sm:$0xff]  }
 0x113   : > { %v4291_v24 = vpack.c.bf16 %v788_v2, %v784_v0  ;;  %1981 = vmatpush2.bf16.msra.mxu1 %v3565_v60  ;;  %v615_v30 = vpop.f32.mrf.mxu0  ;;  %1869 = vmatprep.subr.bf16.mxu0 %v3570_v61  ;;  %v727_v43 = vadd.f32 %v726_v7, %v4010_v46  ;;  %v789_v2 = vmax.f32 %v612_v51, 0.0  ;;  %v791_v5 = vmax.f32 %v725_v54, 0.0  ;;  %v3607_v51 = vld [vmem:[%s4700_s5] sm:$0xff]  }
 0x114   : > { %v728_v31 = vpop.f32.mrf.mxu1  ;;  %v616_v44 = vadd.f32 %v615_v30, %v4013_v47  ;;  %1711 = vmatprep.mubr.bf16.mxu0 %v4293_v26  ;;  %1982 = vmatprep.subr.bf16.mxu1 %v3573_v10  ;;  %v790_v0 = vmax.f32 %v614_v29, 0.0  ;;  %v3580_v10 = vld [vmem:[%s4698_s3 + $0x128] ss:$16 sps:$4 sm:$0xff]  }
 0x115   : > { %v729_v49 = vadd.f32 %v728_v31, %v4017_v48  ;;  %1824 = vmatprep.mubr.bf16.mxu1 %v4291_v24  ;;  %v617_v52 = vpop.f32.mrf.mxu0  ;;  %1712 = vmatmul.mubr.bf16.gmra.mxu0 %v4298_v27  ;;  %v3583_v29 = vld [vmem:[%s4698_s3 + $0x328] ss:$16 sps:$4 sm:$0xff]   ;;  %v3588_v31 = vld [vmem:[%s4698_s3 + $0x10c] ss:$16 sps:$4 sm:$0xff]  }
 0x116   : > { %v730_v53 = vpop.f32.mrf.mxu1  ;;  %v618_v60 = vadd.f32 %v617_v52, %v4006_v45  ;;  %1825 = vmatmul.mubr.bf16.gmra.mxu1 %v4300_v28  ;;  %1870 = vmatpush2.bf16.msra.mxu0 %v3568_v21  ;;  %v793_v47 = vmax.f32 %v616_v44, 0.0  ;;  %v3582_v45 = vld [vmem:[%s4698_s3 + $0x12c] ss:$16 sps:$4 sm:$0xff]   ;;  %v3610_v52 = vld [vmem:[%s4700_s5 + $0xf0] sm:$0xff]  }
 0x117   : > { %v731_v61 = vadd.f32 %v730_v53, %v4010_v46  ;;  %1983 = vmatpush2.bf16.msra.mxu1 %v3571_v34  ;;  %1871 = vmatprep.subr.bf16.mxu0 %v3576_v42  ;;  %v792_v46 = vmax.f32 %v727_v43, 0.0  ;;  %v795_v48 = vmax.f32 %v729_v49, 0.0  ;;  %v3591_v34 = vld [vmem:[%s4698_s3 + $0x30c] ss:$16 sps:$4 sm:$0xff]   ;;  %v3586_v42 = vld [vmem:[%s4698_s3 + $0x108] ss:$16 sps:$4 sm:$0xff]  }
 0x118   : > { %v794_v57 = vmax.f32 %v618_v60, 0.0  ;;  %1984 = vmatprep.subr.bf16.mxu1 %v3579_v50  ;;  %v4342_v21 = vpack.c.bf16 %v793_v47, %v789_v2  ;;  %v3589_v43 = vld [vmem:[%s4698_s3 + $0x308] ss:$16 sps:$4 sm:$0xff]   ;;  %v3594_v49 = vld [vmem:[%s4700_s5 + $0x70] sm:$0xff]  }
 0x119   : > { %v796_v1 = vmax.f32 %v731_v61, 0.0  ;;  %v4347_v30 = vpack.c.bf16 %v795_v48, %v791_v5  ;;  %v3592_v44 = vld [vmem:[%s4700_s5 + $0x78] sm:$0xff]   ;;  %v3596_v50 = vld [vmem:[%s4700_s5 + $0x68] sm:$0xff]  }
 0x11a   : > { %1872 = vmatpush2.bf16.msra.mxu0 %v3574_v63  ;;  %v4337_v7 = vpack.c.bf16 %v794_v57, %v790_v0 }
 0x11b   : > { %v4335_v6 = vpack.c.bf16 %v796_v1, %v792_v46  ;;  %1985 = vmatpush2.bf16.msra.mxu1 %v3577_v55  ;;  %1873 = vmatprep.subr.bf16.mxu0 %v3582_v45 }
 0x11c   : > { %1721 = vmatprep.mubr.bf16.mxu0 %v4337_v7  ;;  %1986 = vmatprep.subr.bf16.mxu1 %v3585_v4 }
 0x11d   : > { %1834 = vmatprep.mubr.bf16.mxu1 %v4335_v6  ;;  %1722 = vmatmul.mubr.bf16.gmra.mxu0 %v4342_v21 }
 0x11e   : > { %1835 = vmatmul.mubr.bf16.gmra.mxu1 %v4347_v30  ;;  %1874 = vmatpush2.bf16.msra.mxu0 %v3580_v10 }
 0x11f   : > { %1877 = vmatprep.mubr.bf16.mxu0 %v4027_v12  ;;  %1987 = vmatpush2.bf16.msra.mxu1 %v3583_v29  ;;  %v3593_v12 = vld [vmem:[%s4700_s5 + $0x38] sm:$0xff]  }
 0x120   : > { %1990 = vmatprep.mubr.bf16.mxu1 %v4029_v13  ;;  %1875 = vmatprep.subr.bf16.mxu0 %v3588_v31  ;;  %v3595_v13 = vld [vmem:[%s4700_s5 + $0x30] sm:$0xff]  }
 0x121   : > { %1988 = vmatprep.subr.bf16.mxu1 %v3591_v34 }
 0x122   : > { %1876 = vmatpush2.bf16.msra.mxu0 %v3586_v42 }
 0x123   : > { %1989 = vmatpush2.bf16.msra.mxu1 %v3589_v43  ;;  %3171 = vmatprep.subr.bf16.mxu0 %v3592_v44 }
 0x125   : > { %1878 = vmatmul.mubr.bf16.vlgmr.msra.gmra.mxu0 %v4037_v16  ;;  %v3597_v16 = vld [vmem:[%s4700_s5 + $0x28] sm:$0xff]  }
 0x126   : > { %1991 = vmatmul.mubr.bf16.vlgmr.msra.gmra.mxu1 %v4039_v17  ;;  %1887 = vmatprep.mubr.bf16.mxu0 %v4071_v56  ;;  %v3598_v17 = vld [vmem:[%s4700_s5 + $0x60] sm:$0xff]  }
 0x127   : > { %2000 = vmatprep.mubr.bf16.mxu1 %v4080_v62  ;;  %3172 = vmatpush3.bf16.msra.mxu0 %v3593_v12  ;;  %v3599_v56 = vld [vmem:[%s4700_s5 + $0x20] sm:$0xff]   ;;  %v3600_v62 = vld [vmem:[%s4700_s5 + $0x58] sm:$0xff]  }
 0x128   : > { %3173 = vmatprep.subr.bf16.mxu0 %v3594_v49 }
 0x12b   : > { %3174 = vmatpush3.bf16.msra.mxu0 %v3595_v13 }
 0x12c   : > { %3175 = vmatprep.subr.bf16.mxu0 %v3596_v50 }
 0x12d   : > { %1888 = vmatmul.mubr.bf16.gmra.mxu0 %v4076_v58  ;;  %v3601_v58 = vld [vmem:[%s4700_s5 + $0x18] sm:$0xff]  }
 0x12e   : > { %2001 = vmatmul.mubr.bf16.gmra.mxu1 %v4078_v59  ;;  %1897 = vmatprep.mubr.bf16.mxu0 %v4115_v32  ;;  %v3602_v59 = vld [vmem:[%s4700_s5 + $0x50] sm:$0xff]  }
 0x12f   : > { %2010 = vmatprep.mubr.bf16.mxu1 %v4117_v33  ;;  %3176 = vmatpush3.bf16.msra.mxu0 %v3597_v16  ;;  %v3603_v32 = vld [vmem:[%s4700_s5 + $0x10] sm:$0xff]   ;;  %v3604_v33 = vld [vmem:[%s4700_s5 + $0x48] sm:$0xff]  }
 0x130   : > { %3177 = vmatprep.subr.bf16.mxu0 %v3598_v17 }
 0x133   : > { %3178 = vmatpush3.bf16.msra.mxu0 %v3599_v56 }
 0x134   : > { %3179 = vmatprep.subr.bf16.mxu0 %v3600_v62 }
 0x135   : > { %1898 = vmatmul.mubr.bf16.gmra.mxu0 %v4122_v35  ;;  %v3608_v35 = vld [vmem:[%s4700_s5 + $0xf8] sm:$0xff]  }
 0x136   : > { %2011 = vmatmul.mubr.bf16.gmra.mxu1 %v4124_v36  ;;  %1907 = vmatprep.mubr.bf16.mxu0 %v4159_v22  ;;  %v3609_v36 = vld [vmem:[%s4700_s5 + $0xb8] sm:$0xff]   ;;  %v3605_v22 = vld [vmem:[%s4700_s5 + $0x8] sm:$0xff]  }
 0x137   : > { %2020 = vmatprep.mubr.bf16.mxu1 %v4161_v23  ;;  %3180 = vmatpush3.bf16.msra.mxu0 %v3601_v58  ;;  %v3606_v23 = vld [vmem:[%s4700_s5 + $0x40] sm:$0xff]  }
 0x138   : > { %3181 = vmatprep.subr.bf16.mxu0 %v3602_v59  ;;  %3235 = vmatprep.subr.bf16.mxu1 %v3608_v35 }
 0x139   : > { %3236 = vmatpush3.bf16.msra.mxu1 %v3609_v36 }
 0x13a   : > { %3237 = vmatprep.subr.bf16.mxu1 %v3610_v52 }
 0x13b   : > { %3182 = vmatpush3.bf16.msra.mxu0 %v3603_v32 }
 0x13c   : > { %3183 = vmatprep.subr.bf16.mxu0 %v3604_v33 }
 0x13d   : > { %1908 = vmatmul.mubr.bf16.gmra.mxu0 %v4166_v3  ;;  %v3611_v3 = vld [vmem:[%s4700_s5 + $0xb0] sm:$0xff]  }
 0x13e   : > { %2021 = vmatmul.mubr.bf16.gmra.mxu1 %v4168_v25  ;;  %1917 = vmatprep.mubr.bf16.mxu0 %v4203_v11  ;;  %v3612_v25 = vld [vmem:[%s4700_s5 + $0xe8] sm:$0xff]  }
 0x13f   : > { %2030 = vmatprep.mubr.bf16.mxu1 %v4205_v14  ;;  %3184 = vmatpush3.bf16.msra.mxu0 %v3605_v22  ;;  %v3613_v11 = vld [vmem:[%s4700_s5 + $0xa8] sm:$0xff]   ;;  %v3614_v14 = vld [vmem:[%s4700_s5 + $0xe0] sm:$0xff]  }
 0x140   : > { %3185 = vmatprep.subr.bf16.mxu0 %v3606_v23  ;;  %3238 = vmatpush3.bf16.msra.mxu1 %v3611_v3 }
 0x141   : > { %3239 = vmatprep.subr.bf16.mxu1 %v3612_v25 }
 0x143   : > { %3186 = vmatpush3.bf16.msra.mxu0 %v3607_v51 }
 0x144   : > { %3240 = vmatpush3.bf16.msra.mxu1 %v3613_v11 }
 0x145   : > { %1918 = vmatmul.mubr.bf16.gmra.mxu0 %v4210_v18  ;;  %v3615_v18 = vld [vmem:[%s4700_s5 + $0xa0] sm:$0xff]   ;;  %3241 = vmatprep.subr.bf16.mxu1 %v3614_v14 }
 0x146   : > { %2031 = vmatmul.mubr.bf16.gmra.mxu1 %v4212_v19  ;;  %1927 = vmatprep.mubr.bf16.mxu0 %v4249_v9  ;;  %v3616_v19 = vld [vmem:[%s4700_s5 + $0xd8] sm:$0xff]   ;;  %v3618_v9 = vld [vmem:[%s4700_s5 + $0xd0] sm:$0xff]  }
 0x147   : > { %2040 = vmatprep.mubr.bf16.mxu1 %v4247_v8  ;;  %v3617_v8 = vld [vmem:[%s4700_s5 + $0x98] sm:$0xff]  }
 0x148   : > { %3242 = vmatpush3.bf16.msra.mxu1 %v3615_v18 }
 0x149   : > { %3243 = vmatprep.subr.bf16.mxu1 %v3616_v19 }
 0x14c   : > { %3244 = vmatpush3.bf16.msra.mxu1 %v3617_v8 }
 0x14d   : > { %1928 = vmatmul.mubr.bf16.gmra.mxu0 %v4254_v15  ;;  %v3619_v15 = vld [vmem:[%s4700_s5 + $0x90] sm:$0xff]   ;;  %3245 = vmatprep.subr.bf16.mxu1 %v3618_v9 }
 0x14e   : > { %2041 = vmatmul.mubr.bf16.gmra.mxu1 %v4256_v20  ;;  %1937 = vmatprep.mubr.bf16.mxu0 %v4293_v26  ;;  %v3620_v20 = vld [vmem:[%s4700_s5 + $0xc8] sm:$0xff]   ;;  %v3622_v26 = vld [vmem:[%s4700_s5 + $0xc0] sm:$0xff]  }
 0x14f   : > { %2050 = vmatprep.mubr.bf16.mxu1 %v4291_v24  ;;  %v3621_v24 = vld [vmem:[%s4700_s5 + $0x88] sm:$0xff]  }
 0x150   : > { %3246 = vmatpush3.bf16.msra.mxu1 %v3619_v15 }
 0x151   : > { %3247 = vmatprep.subr.bf16.mxu1 %v3620_v20 }
 0x154   : > { %3248 = vmatpush3.bf16.msra.mxu1 %v3621_v24 }
 0x155   : > { %1938 = vmatmul.mubr.bf16.gmra.mxu0 %v4298_v27  ;;  %v3623_v27 = vld [vmem:[%s4700_s5 + $0x80] sm:$0xff]   ;;  %3249 = vmatprep.subr.bf16.mxu1 %v3622_v26 }
 0x156   : > { %2051 = vmatmul.mubr.bf16.gmra.mxu1 %v4300_v28  ;;  %1947 = vmatprep.mubr.bf16.mxu0 %v4337_v7  ;;  %v4496_v28 = vld [vmem:[%s4699_s4] sm:$0xf] }
 0x157   : > { %2060 = vmatprep.mubr.bf16.mxu1 %v4335_v6  ;;  %v4501_v53 = vrot.slane %v4496_v28, %v428_v38  ;;  %v4505_v54 = vrot.slane %v4496_v28, %v3998_v40 }
 0x158   : > { %3250 = vmatpush3.bf16.msra.mxu1 %v3623_v27 }
 0x15d   : > { %1948 = vmatmul.mubr.bf16.gmra.mxu0 %v4342_v21 }
 0x15e   : > { %2061 = vmatmul.mubr.bf16.gmra.mxu1 %v4347_v30 }
 0x1a5   : > { %v1653_v60 = vpop.f32.mrf.mxu0 }
 0x1a6   : > { %v1766_v61 = vpop.f32.mrf.mxu1  ;;  %v1654_v55 = vadd.f32 %v1653_v60, %v4505_v54 }
 0x1a7   : > { %v1655_v63 = vpop.f32.mrf.mxu0 }
 0x1a8   : > { %v1768_v0 = vpop.f32.mrf.mxu1  ;;  %v1656_v47 = vadd.f32 %v1655_v63, %v4501_v53  ;;  %v1767_v5 = vadd.f32 %v1766_v61, %v1654_v55 }
 0x1a9   : > { %v1657_v45 = vpop.f32.mrf.mxu0 }
 0x1aa   : > { %v1770_v46 = vpop.f32.mrf.mxu1  ;;  %v1658_v48 = vadd.f32 %v1657_v45, %v4505_v54  ;;  %v1769_v38 = vadd.f32 %v1768_v0, %v1656_v47  ;;  %v2071_v43 = vmax.f32 %v1767_v5, 0.0 }
 0x1ab   : > { %v1659_v57 = vpop.f32.mrf.mxu0 }
 0x1ac   : > { %v1772_v1 = vpop.f32.mrf.mxu1  ;;  %v1771_v2 = vadd.f32 %v1770_v46, %v1658_v48  ;;  %v1660_v4 = vadd.f32 %v1659_v57, %v4501_v53  ;;  %v2072_v30 = vmax.f32 %v1769_v38, 0.0 }
 0x1ad   : > { %v1663_v6 = vpop.f32.mrf.mxu0 }
 0x1ae   : > { %v1773_v7 = vadd.f32 %v1772_v1, %v1660_v4  ;;  %v1776_v10 = vpop.f32.mrf.mxu1  ;;  %v2075_v21 = vmax.f32 %v1771_v2, 0.0  ;;  %v1664_v44 = vadd.f32 %v1663_v6, %v4505_v54 }
 0x1af   : > { %v1665_v29 = vpop.f32.mrf.mxu0 }
 0x1b0   : > { %v2076_v31 = vmax.f32 %v1773_v7, 0.0  ;;  %v1666_v34 = vadd.f32 %v1665_v29, %v4501_v53  ;;  %v1778_v42 = vpop.f32.mrf.mxu1  ;;  %v2135_v16 = vpack.c.bf16 %v2075_v21, %v2071_v43  ;;  %v1777_v32 = vadd.f32 %v1776_v10, %v1664_v44 }
 0x1b1   : > { %v1667_v12 = vpop.f32.mrf.mxu0 }
 0x1b2   : > { %v2136_v49 = vpack.c.bf16 %v2076_v31, %v2072_v30  ;;  %v1668_v13 = vadd.f32 %v1667_v12, %v4505_v54  ;;  %v1780_v50 = vpop.f32.mrf.mxu1  ;;  %v1779_v56 = vadd.f32 %v1778_v42, %v1666_v34  ;;  %v2079_v11 = vmax.f32 %v1777_v32, 0.0 }
 0x1b3   : > { %v1669_v17 = vpop.f32.mrf.mxu0 }
 0x1b4   : > { %v1781_v62 = vadd.f32 %v1780_v50, %v1668_v13  ;;  %v1670_v58 = vadd.f32 %v1669_v17, %v4501_v53  ;;  %v1782_v59 = vpop.f32.mrf.mxu1  ;;  %2462 = vmatprep.mubr.bf16.mxu0 %v2136_v49  ;;  %v2080_v51 = vmax.f32 %v1779_v56, 0.0 }
 0x1b5   : > { %v1673_v33 = vpop.f32.mrf.mxu0  ;;  %2463 = vmatmul.mubr.bf16.vlgmr.msra.gmra.mxu0 %v2135_v16 }
 0x1b6   : > { %v1783_v35 = vadd.f32 %v1782_v59, %v1670_v58  ;;  %v1786_v36 = vpop.f32.mrf.mxu1  ;;  %v2083_v22 = vmax.f32 %v1781_v62, 0.0  ;;  %v1674_v14 = vadd.f32 %v1673_v33, %v4505_v54 }
 0x1b7   : > { %v1675_v23 = vpop.f32.mrf.mxu0 }
 0x1b8   : > { %v2084_v52 = vmax.f32 %v1783_v35, 0.0  ;;  %v1676_v3 = vadd.f32 %v1675_v23, %v4501_v53  ;;  %v1788_v25 = vpop.f32.mrf.mxu1  ;;  %v2139_v15 = vpack.c.bf16 %v2083_v22, %v2079_v11  ;;  %v1787_v61 = vadd.f32 %v1786_v36, %v1674_v14 }
 0x1b9   : > { %v1677_v18 = vpop.f32.mrf.mxu0 }
 0x1ba   : > { %v2140_v19 = vpack.c.bf16 %v2084_v52, %v2080_v51  ;;  %v1678_v8 = vadd.f32 %v1677_v18, %v4505_v54  ;;  %v1790_v9 = vpop.f32.mrf.mxu1  ;;  %v1789_v24 = vadd.f32 %v1788_v25, %v1676_v3  ;;  %v2087_v38 = vmax.f32 %v1787_v61, 0.0 }
 0x1bb   : > { %v1679_v20 = vpop.f32.mrf.mxu0 }
 0x1bc   : > { %v1791_v26 = vadd.f32 %v1790_v9, %v1678_v8  ;;  %v1680_v27 = vadd.f32 %v1679_v20, %v4501_v53  ;;  %v1792_v60 = vpop.f32.mrf.mxu1  ;;  %2470 = vmatprep.mubr.bf16.mxu0 %v2140_v19  ;;  %v2088_v46 = vmax.f32 %v1789_v24, 0.0 }
 0x1bd   : > { %v1683_v63 = vpop.f32.mrf.mxu0  ;;  %2471 = vmatmul.mubr.bf16.gmra.mxu0 %v2139_v15 }
 0x1be   : > { %v1793_v0 = vadd.f32 %v1792_v60, %v1680_v27  ;;  %v1796_v47 = vpop.f32.mrf.mxu1  ;;  %v2091_v55 = vmax.f32 %v1791_v26, 0.0  ;;  %v1684_v2 = vadd.f32 %v1683_v63, %v4505_v54 }
 0x1bf   : > { %v1685_v45 = vpop.f32.mrf.mxu0 }
 0x1c0   : > { %v2092_v48 = vmax.f32 %v1793_v0, 0.0  ;;  %v1686_v57 = vadd.f32 %v1685_v45, %v4501_v53  ;;  %v1798_v1 = vpop.f32.mrf.mxu1  ;;  %v2143_v10 = vpack.c.bf16 %v2091_v55, %v2087_v38  ;;  %v1797_v42 = vadd.f32 %v1796_v47, %v1684_v2 }
 0x1c1   : > { %v1687_v4 = vpop.f32.mrf.mxu0 }
 0x1c2   : > { %v2144_v5 = vpack.c.bf16 %v2092_v48, %v2088_v46  ;;  %v1688_v6 = vadd.f32 %v1687_v4, %v4505_v54  ;;  %v1800_v7 = vpop.f32.mrf.mxu1  ;;  %v1799_v29 = vadd.f32 %v1798_v1, %v1686_v57  ;;  %v2095_v62 = vmax.f32 %v1797_v42, 0.0 }
 0x1c3   : > { %v1689_v21 = vpop.f32.mrf.mxu0 }
 0x1c4   : > { %v1801_v30 = vadd.f32 %v1800_v7, %v1688_v6  ;;  %v1690_v31 = vadd.f32 %v1689_v21, %v4501_v53  ;;  %v1802_v34 = vpop.f32.mrf.mxu1  ;;  %2478 = vmatprep.mubr.bf16.mxu0 %v2144_v5  ;;  %v2096_v50 = vmax.f32 %v1799_v29, 0.0 }
 0x1c5   : > { %v1693_v43 = vpop.f32.mrf.mxu0  ;;  %2479 = vmatmul.mubr.bf16.gmra.mxu0 %v2143_v10 }
 0x1c6   : > { %v1803_v44 = vadd.f32 %v1802_v34, %v1690_v31  ;;  %v1806_v12 = vpop.f32.mrf.mxu1  ;;  %v2099_v49 = vmax.f32 %v1801_v30, 0.0  ;;  %v1694_v58 = vadd.f32 %v1693_v43, %v4505_v54 }
 0x1c7   : > { %v1695_v13 = vpop.f32.mrf.mxu0 }
 0x1c8   : > { %v2100_v16 = vmax.f32 %v1803_v44, 0.0  ;;  %v1696_v17 = vadd.f32 %v1695_v13, %v4501_v53  ;;  %v1808_v56 = vpop.f32.mrf.mxu1  ;;  %v2147_v36 = vpack.c.bf16 %v2099_v49, %v2095_v62  ;;  %v1807_v25 = vadd.f32 %v1806_v12, %v1694_v58 }
 0x1c9   : > { %v1697_v59 = vpop.f32.mrf.mxu0 }
 0x1ca   : > { %v2148_v32 = vpack.c.bf16 %v2100_v16, %v2096_v50  ;;  %v1698_v33 = vadd.f32 %v1697_v59, %v4505_v54  ;;  %v1810_v35 = vpop.f32.mrf.mxu1  ;;  %v1809_v23 = vadd.f32 %v1808_v56, %v1696_v17  ;;  %v2103_v26 = vmax.f32 %v1807_v25, 0.0 }
 0x1cb   : > { %v1699_v22 = vpop.f32.mrf.mxu0 }
 0x1cc   : > { %v1811_v51 = vadd.f32 %v1810_v35, %v1698_v33  ;;  %v1700_v52 = vadd.f32 %v1699_v22, %v4501_v53  ;;  %v1812_v3 = vpop.f32.mrf.mxu1  ;;  %2486 = vmatprep.mubr.bf16.mxu0 %v2148_v32  ;;  %v2104_v9 = vmax.f32 %v1809_v23, 0.0 }
 0x1cd   : > { %v1703_v11 = vpop.f32.mrf.mxu0  ;;  %2487 = vmatmul.mubr.bf16.gmra.mxu0 %v2147_v36 }
 0x1ce   : > { %v1813_v14 = vadd.f32 %v1812_v3, %v1700_v52  ;;  %v1816_v18 = vpop.f32.mrf.mxu1  ;;  %v2107_v19 = vmax.f32 %v1811_v51, 0.0  ;;  %v1704_v27 = vadd.f32 %v1703_v11, %v4505_v54 }
 0x1cf   : > { %v1705_v8 = vpop.f32.mrf.mxu0 }
 0x1d0   : > { %v2108_v15 = vmax.f32 %v1813_v14, 0.0  ;;  %v1706_v20 = vadd.f32 %v1705_v8, %v4501_v53  ;;  %v1818_v24 = vpop.f32.mrf.mxu1  ;;  %v2151_v47 = vpack.c.bf16 %v2107_v19, %v2103_v26  ;;  %v1817_v1 = vadd.f32 %v1816_v18, %v1704_v27 }
 0x1d1   : > { %v1707_v60 = vpop.f32.mrf.mxu0  ;;  %v4547_v27 = vrot.slane %v4496_v28, %v432_v41 }
 0x1d2   : > { %v2152_v61 = vpack.c.bf16 %v2108_v15, %v2104_v9  ;;  %v1708_v63 = vadd.f32 %v1707_v60, %v4505_v54  ;;  %v1820_v0 = vpop.f32.mrf.mxu1  ;;  %v1819_v45 = vadd.f32 %v1818_v24, %v1706_v20  ;;  %v2111_v30 = vmax.f32 %v1817_v1, 0.0 }
 0x1d3   : > { %v1709_v55 = vpop.f32.mrf.mxu0  ;;  %v4542_v24 = vrot.slane %v4496_v28, %v436_v39 }
 0x1d4   : > { %v1821_v46 = vadd.f32 %v1820_v0, %v1708_v63  ;;  %v1710_v48 = vadd.f32 %v1709_v55, %v4501_v53  ;;  %v1822_v57 = vpop.f32.mrf.mxu1  ;;  %2494 = vmatprep.mubr.bf16.mxu0 %v2152_v61  ;;  %v2112_v7 = vmax.f32 %v1819_v45, 0.0 }
 0x1d5   : > { %v1713_v38 = vpop.f32.mrf.mxu0  ;;  %2495 = vmatmul.mubr.bf16.gmra.mxu0 %v2151_v47 }
 0x1d6   : > { %v1823_v2 = vadd.f32 %v1822_v57, %v1710_v48  ;;  %v1826_v4 = vpop.f32.mrf.mxu1  ;;  %v2115_v5 = vmax.f32 %v1821_v46, 0.0  ;;  %v1714_v31 = vadd.f32 %v1713_v38, %v4505_v54 }
 0x1d7   : > { %v1715_v6 = vpop.f32.mrf.mxu0 }
 0x1d8   : > { %v2116_v10 = vmax.f32 %v1823_v2, 0.0  ;;  %v1716_v21 = vadd.f32 %v1715_v6, %v4501_v53  ;;  %v1828_v29 = vpop.f32.mrf.mxu1  ;;  %v2155_v12 = vpack.c.bf16 %v2115_v5, %v2111_v30  ;;  %v1827_v56 = vadd.f32 %v1826_v4, %v1714_v31 }
 0x1d9   : > { %v1717_v34 = vpop.f32.mrf.mxu0 }
 0x1da   : > { %v2156_v42 = vpack.c.bf16 %v2116_v10, %v2112_v7  ;;  %v1718_v43 = vadd.f32 %v1717_v34, %v4505_v54  ;;  %v1830_v44 = vpop.f32.mrf.mxu1  ;;  %v1829_v13 = vadd.f32 %v1828_v29, %v1716_v21  ;;  %v2119_v51 = vmax.f32 %v1827_v56, 0.0 }
 0x1db   : > { %v1719_v49 = vpop.f32.mrf.mxu0 }
 0x1dc   : > { %v1831_v50 = vadd.f32 %v1830_v44, %v1718_v43  ;;  %v1720_v16 = vadd.f32 %v1719_v49, %v4501_v53  ;;  %v1832_v17 = vpop.f32.mrf.mxu1  ;;  %2502 = vmatprep.mubr.bf16.mxu0 %v2156_v42  ;;  %v2120_v35 = vmax.f32 %v1829_v13, 0.0 }
 0x1dd   : > { %v1723_v62 = vpop.f32.mrf.mxu0  ;;  %2503 = vmatmul.mubr.bf16.gmra.mxu0 %v2155_v12 }
 0x1de   : > { %v1833_v58 = vadd.f32 %v1832_v17, %v1720_v16  ;;  %v1836_v59 = vpop.f32.mrf.mxu1  ;;  %v2123_v32 = vmax.f32 %v1831_v50, 0.0  ;;  %v1724_v52 = vadd.f32 %v1723_v62, %v4505_v54 }
 0x1df   : > { %v1725_v33 = vpop.f32.mrf.mxu0 }
 0x1e0   : > { %v2124_v36 = vmax.f32 %v1833_v58, 0.0  ;;  %v1726_v22 = vadd.f32 %v1725_v33, %v4501_v53  ;;  %v1838_v23 = vpop.f32.mrf.mxu1  ;;  %v2159_v18 = vpack.c.bf16 %v2123_v32, %v2119_v51  ;;  %v1837_v26 = vadd.f32 %v1836_v59, %v1724_v52 }
 0x1e1   : > { %v1727_v3 = vpop.f32.mrf.mxu0 }
 0x1e2   : > { %v2160_v25 = vpack.c.bf16 %v2124_v36, %v2120_v35  ;;  %v1728_v11 = vadd.f32 %v1727_v3, %v4505_v54  ;;  %v1840_v14 = vpop.f32.mrf.mxu1  ;;  %v1839_v8 = vadd.f32 %v1838_v23, %v1726_v22  ;;  %v2127_v46 = vmax.f32 %v1837_v26, 0.0 }
 0x1e3   : > { %v1729_v19 = vpop.f32.mrf.mxu0 }
 0x1e4   : > { %v1841_v9 = vadd.f32 %v1840_v14, %v1728_v11  ;;  %v1730_v15 = vadd.f32 %v1729_v19, %v4501_v53  ;;  %v1842_v20 = vpop.f32.mrf.mxu1  ;;  %2510 = vmatprep.mubr.bf16.mxu0 %v2160_v25  ;;  %v2128_v53 = vmax.f32 %v1839_v8, 0.0 }
 0x1e5   : > { %v1879_v54 = vpop.f32.mrf.mxu0  ;;  %2511 = vmatmul.mubr.bf16.gmra.mxu0 %v2159_v18 }
 0x1e6   : > { %v1843_v60 = vadd.f32 %v1842_v20, %v1730_v15  ;;  %v1992_v61 = vpop.f32.mrf.mxu1  ;;  %v2131_v63 = vmax.f32 %v1841_v9, 0.0  ;;  %v1880_v39 = vadd.f32 %v1879_v54, %v4547_v27 }
 0x1e7   : > { %v1881_v0 = vpop.f32.mrf.mxu0 }
 0x1e8   : > { %v2132_v47 = vmax.f32 %v1843_v60, 0.0  ;;  %v1882_v55 = vadd.f32 %v1881_v0, %v4542_v24  ;;  %v1994_v45 = vpop.f32.mrf.mxu1  ;;  %v2163_v28 = vpack.c.bf16 %v2131_v63, %v2127_v46  ;;  %v1993_v6 = vadd.f32 %v1992_v61, %v1880_v39 }
 0x1e9   : > { %v1883_v48 = vpop.f32.mrf.mxu0 }
 0x1ea   : > { %v2164_v57 = vpack.c.bf16 %v2132_v47, %v2128_v53  ;;  %v1884_v37 = vadd.f32 %v1883_v48, %v4547_v27  ;;  %v1996_v41 = vpop.f32.mrf.mxu1  ;;  %v1995_v38 = vadd.f32 %v1994_v45, %v1882_v55  ;;  %v2073_v44 = vmax.f32 %v1993_v6, 0.0 }
 0x1eb   : > { %v1885_v1 = vpop.f32.mrf.mxu0 }
 0x1ec   : > { %v1997_v2 = vadd.f32 %v1996_v41, %v1884_v37  ;;  %v1886_v4 = vadd.f32 %v1885_v1, %v4542_v24  ;;  %v1998_v5 = vpop.f32.mrf.mxu1  ;;  %2518 = vmatprep.mubr.bf16.mxu0 %v2164_v57  ;;  %v2074_v31 = vmax.f32 %v1995_v38, 0.0 }
 0x1ed   : > { %v1889_v7 = vpop.f32.mrf.mxu0  ;;  %2519 = vmatmul.mubr.bf16.gmra.mxu0 %v2163_v28 }
 0x1ee   : > { %v1999_v10 = vadd.f32 %v1998_v5, %v1886_v4  ;;  %v2002_v21 = vpop.f32.mrf.mxu1  ;;  %v2077_v29 = vmax.f32 %v1997_v2, 0.0  ;;  %v1890_v12 = vadd.f32 %v1889_v7, %v4547_v27 }
 0x1ef   : > { %v1891_v30 = vpop.f32.mrf.mxu0 }
 0x1f0   : > { %v2078_v34 = vmax.f32 %v1999_v10, 0.0  ;;  %v1892_v42 = vadd.f32 %v1891_v30, %v4542_v24  ;;  %v2004_v43 = vpop.f32.mrf.mxu1  ;;  %v2137_v17 = vpack.c.bf16 %v2077_v29, %v2073_v44  ;;  %v2003_v33 = vadd.f32 %v2002_v21, %v1890_v12 }
 0x1f1   : > { %v1893_v49 = vpop.f32.mrf.mxu0 }
 0x1f2   : > { %v2138_v13 = vpack.c.bf16 %v2078_v34, %v2074_v31  ;;  %v1894_v50 = vadd.f32 %v1893_v49, %v4547_v27  ;;  %v2006_v16 = vpop.f32.mrf.mxu1  ;;  %v2005_v62 = vadd.f32 %v2004_v43, %v1892_v42  ;;  %v2081_v14 = vmax.f32 %v2003_v33, 0.0 }
 0x1f3   : > { %v1895_v56 = vpop.f32.mrf.mxu0 }
 0x1f4   : > { %v2007_v58 = vadd.f32 %v2006_v16, %v1894_v50  ;;  %v1896_v59 = vadd.f32 %v1895_v56, %v4542_v24  ;;  %v2008_v32 = vpop.f32.mrf.mxu1  ;;  %2559 = vmatprep.mubr.bf16.mxu1 %v2138_v13  ;;  %v2082_v52 = vmax.f32 %v2005_v62, 0.0 }
 0x1f5   : > { %v1899_v35 = vpop.f32.mrf.mxu0  ;;  %2560 = vmatmul.mubr.bf16.vlgmr.msra.gmra.mxu1 %v2137_v17 }
 0x1f6   : > { %v2009_v36 = vadd.f32 %v2008_v32, %v1896_v59  ;;  %v2012_v22 = vpop.f32.mrf.mxu1  ;;  %v2085_v23 = vmax.f32 %v2007_v58, 0.0  ;;  %v1900_v18 = vadd.f32 %v1899_v35, %v4547_v27 }
 0x1f7   : > { %v1901_v51 = vpop.f32.mrf.mxu0 }
 0x1f8   : > { %v2086_v3 = vmax.f32 %v2009_v36, 0.0  ;;  %v1902_v25 = vadd.f32 %v1901_v51, %v4542_v24  ;;  %v2014_v11 = vpop.f32.mrf.mxu1  ;;  %v2141_v20 = vpack.c.bf16 %v2085_v23, %v2081_v14  ;;  %v2013_v0 = vadd.f32 %v2012_v22, %v1900_v18 }
 0x1f9   : > { %v1903_v19 = vpop.f32.mrf.mxu0 }
 0x1fa   : > { %v2142_v8 = vpack.c.bf16 %v2086_v3, %v2082_v52  ;;  %v1904_v9 = vadd.f32 %v1903_v19, %v4547_v27  ;;  %v2016_v15 = vpop.f32.mrf.mxu1  ;;  %v2015_v54 = vadd.f32 %v2014_v11, %v1902_v25  ;;  %v2089_v41 = vmax.f32 %v2013_v0, 0.0 }
 0x1fb   : > { %v1905_v26 = vpop.f32.mrf.mxu0 }
 0x1fc   : > { %v2017_v60 = vadd.f32 %v2016_v15, %v1904_v9  ;;  %v1906_v61 = vadd.f32 %v1905_v26, %v4542_v24  ;;  %v2018_v63 = vpop.f32.mrf.mxu1  ;;  %2567 = vmatprep.mubr.bf16.mxu1 %v2142_v8  ;;  %v2090_v39 = vmax.f32 %v2015_v54, 0.0 }
 0x1fd   : > { %v1909_v53 = vpop.f32.mrf.mxu0  ;;  %2568 = vmatmul.mubr.bf16.gmra.mxu1 %v2141_v20 }
 0x1fe   : > { %v2019_v47 = vadd.f32 %v2018_v63, %v1906_v61  ;;  %v2022_v55 = vpop.f32.mrf.mxu1  ;;  %v2093_v45 = vmax.f32 %v2017_v60, 0.0  ;;  %v1910_v28 = vadd.f32 %v1909_v53, %v4547_v27 }
 0x1ff   : > { %v1911_v46 = vpop.f32.mrf.mxu0 }
 0x200   : > { %v2094_v48 = vmax.f32 %v2019_v47, 0.0  ;;  %v1912_v57 = vadd.f32 %v1911_v46, %v4542_v24  ;;  %v2024_v37 = vpop.f32.mrf.mxu1  ;;  %v2145_v5 = vpack.c.bf16 %v2093_v45, %v2089_v41  ;;  %v2023_v30 = vadd.f32 %v2022_v55, %v1910_v28 }
 0x201   : > { %v1913_v1 = vpop.f32.mrf.mxu0 }
 0x202   : > { %v2146_v38 = vpack.c.bf16 %v2094_v48, %v2090_v39  ;;  %v1914_v2 = vadd.f32 %v1913_v1, %v4547_v27  ;;  %v2026_v4 = vpop.f32.mrf.mxu1  ;;  %v2025_v7 = vadd.f32 %v2024_v37, %v1912_v57  ;;  %v2097_v16 = vmax.f32 %v2023_v30, 0.0 }
 0x203   : > { %v1915_v6 = vpop.f32.mrf.mxu0 }
 0x204   : > { %v2027_v10 = vadd.f32 %v2026_v4, %v1914_v2  ;;  %v1916_v21 = vadd.f32 %v1915_v6, %v4542_v24  ;;  %v2028_v29 = vpop.f32.mrf.mxu1  ;;  %2575 = vmatprep.mubr.bf16.mxu1 %v2146_v38  ;;  %v2098_v12 = vmax.f32 %v2025_v7, 0.0 }
 0x205   : > { %v1919_v31 = vpop.f32.mrf.mxu0  ;;  %2576 = vmatmul.mubr.bf16.gmra.mxu1 %v2145_v5 }
 0x206   : > { %v2029_v34 = vadd.f32 %v2028_v29, %v1916_v21  ;;  %v2032_v42 = vpop.f32.mrf.mxu1  ;;  %v2101_v43 = vmax.f32 %v2027_v10, 0.0  ;;  %v1920_v17 = vadd.f32 %v1919_v31, %v4547_v27 }
 0x207   : > { %v1921_v44 = vpop.f32.mrf.mxu0 }
 0x208   : > { %v2102_v49 = vmax.f32 %v2029_v34, 0.0  ;;  %v1922_v13 = vadd.f32 %v1921_v44, %v4542_v24  ;;  %v2034_v50 = vpop.f32.mrf.mxu1  ;;  %v2149_v32 = vpack.c.bf16 %v2101_v43, %v2097_v16  ;;  %v2033_v51 = vadd.f32 %v2032_v42, %v1920_v17 }
 0x209   : > { %v1923_v56 = vpop.f32.mrf.mxu0 }
 0x20a   : > { %v2150_v62 = vpack.c.bf16 %v2102_v49, %v2098_v12  ;;  %v1924_v58 = vadd.f32 %v1923_v56, %v4547_v27  ;;  %v2036_v59 = vpop.f32.mrf.mxu1  ;;  %v2035_v35 = vadd.f32 %v2034_v50, %v1922_v13  ;;  %v2105_v15 = vmax.f32 %v2033_v51, 0.0 }
 0x20b   : > { %v1925_v33 = vpop.f32.mrf.mxu0 }
 0x20c   : > { %v2037_v36 = vadd.f32 %v2036_v59, %v1924_v58  ;;  %v1926_v22 = vadd.f32 %v1925_v33, %v4542_v24  ;;  %v2038_v23 = vpop.f32.mrf.mxu1  ;;  %2583 = vmatprep.mubr.bf16.mxu1 %v2150_v62  ;;  %v2106_v18 = vmax.f32 %v2035_v35, 0.0 }
 0x20d   : > { %v1929_v52 = vpop.f32.mrf.mxu0  ;;  %2584 = vmatmul.mubr.bf16.gmra.mxu1 %v2149_v32 }
 0x20e   : > { %v2039_v3 = vadd.f32 %v2038_v23, %v1926_v22  ;;  %v2042_v25 = vpop.f32.mrf.mxu1  ;;  %v2109_v11 = vmax.f32 %v2037_v36, 0.0  ;;  %v1930_v20 = vadd.f32 %v1929_v52, %v4547_v27 }
 0x20f   : > { %v1931_v14 = vpop.f32.mrf.mxu0 }
 0x210   : > { %v2110_v19 = vmax.f32 %v2039_v3, 0.0  ;;  %v1932_v8 = vadd.f32 %v1931_v14, %v4542_v24  ;;  %v2044_v9 = vpop.f32.mrf.mxu1  ;;  %v2153_v63 = vpack.c.bf16 %v2109_v11, %v2105_v15  ;;  %v2043_v46 = vadd.f32 %v2042_v25, %v1930_v20 }
 0x211   : > { %v1933_v26 = vpop.f32.mrf.mxu0 }
 0x212   : > { %v2154_v54 = vpack.c.bf16 %v2110_v19, %v2106_v18  ;;  %v1934_v60 = vadd.f32 %v1933_v26, %v4547_v27  ;;  %v2046_v61 = vpop.f32.mrf.mxu1  ;;  %v2045_v53 = vadd.f32 %v2044_v9, %v1932_v8  ;;  %v2113_v4 = vmax.f32 %v2043_v46, 0.0  ;;  %v3624_v19 = vld [vmem:[%s4702_s7 + $0x38] sm:$0xff]  }
 0x213   : > { %v1935_v0 = vpop.f32.mrf.mxu0  ;;  %3324 = vmatprep.subr.bf16.mxu0 %v3624_v19 }
 0x214   : > { %v2047_v47 = vadd.f32 %v2046_v61, %v1934_v60  ;;  %v1936_v55 = vadd.f32 %v1935_v0, %v4542_v24  ;;  %v2048_v45 = vpop.f32.mrf.mxu1  ;;  %2591 = vmatprep.mubr.bf16.mxu1 %v2154_v54  ;;  %v2114_v28 = vmax.f32 %v2045_v53, 0.0  ;;  %3325 = vmatpush3.bf16.msra.mxu0 %v3624_v19  ;;  %v3626_v54 = vld [vmem:[%s4702_s7 + $0x28] sm:$0xff]   ;;  %v3627_v60 = vld [vmem:[%s4702_s7 + $0x20] sm:$0xff]   ;;  %v3628_v61 = vld [vmem:[%s4702_s7 + $0x18] sm:$0xff]  }
 0x215   : > { %v1939_v39 = vpop.f32.mrf.mxu0  ;;  %2592 = vmatmul.mubr.bf16.gmra.mxu1 %v2153_v63  ;;  %v3629_v63 = vld [vmem:[%s4702_s7 + $0x10] sm:$0xff]   ;;  %v3630_v0 = vld [vmem:[%s4702_s7 + $0x8] sm:$0xff]   ;;  %v3631_v53 = vld [vmem:[%s4702_s7] sm:$0xff]  }
 0x216   : > { %v2049_v48 = vadd.f32 %v2048_v45, %v1936_v55  ;;  %v2052_v57 = vpop.f32.mrf.mxu1  ;;  %v2117_v37 = vmax.f32 %v2047_v47, 0.0  ;;  %v1940_v5 = vadd.f32 %v1939_v39, %v4547_v27 }
 0x217   : > { %v1941_v41 = vpop.f32.mrf.mxu0 }
 0x218   : > { %v2118_v1 = vmax.f32 %v2049_v48, 0.0  ;;  %v1942_v38 = vadd.f32 %v1941_v41, %v4542_v24  ;;  %v2054_v2 = vpop.f32.mrf.mxu1  ;;  %v2157_v29 = vpack.c.bf16 %v2117_v37, %v2113_v4  ;;  %v2053_v44 = vadd.f32 %v2052_v57, %v1940_v5 }
 0x219   : > { %v1943_v6 = vpop.f32.mrf.mxu0 }
 0x21a   : > { %v2158_v7 = vpack.c.bf16 %v2118_v1, %v2114_v28  ;;  %v1944_v10 = vadd.f32 %v1943_v6, %v4547_v27  ;;  %v2056_v21 = vpop.f32.mrf.mxu1  ;;  %v2055_v31 = vadd.f32 %v2054_v2, %v1942_v38  ;;  %v2121_v59 = vmax.f32 %v2053_v44, 0.0 }
 0x21b   : > { %v1945_v30 = vpop.f32.mrf.mxu0 }
 0x21c   : > { %v2057_v34 = vadd.f32 %v2056_v21, %v1944_v10  ;;  %v1946_v42 = vadd.f32 %v1945_v30, %v4542_v24  ;;  %v2058_v43 = vpop.f32.mrf.mxu1  ;;  %2599 = vmatprep.mubr.bf16.mxu1 %v2158_v7  ;;  %v2122_v17 = vmax.f32 %v2055_v31, 0.0  ;;  %v4612_v30 = vld [vmem:[%s4701_s6] ss:$0 sm:$0xff] }
 0x21d   : > { %v1949_v12 = vpop.f32.mrf.mxu0  ;;  %2600 = vmatmul.mubr.bf16.gmra.mxu1 %v2157_v29 }
 0x21e   : > { %v2059_v49 = vadd.f32 %v2058_v43, %v1946_v42  ;;  %v2062_v13 = vpop.f32.mrf.mxu1  ;;  %v2125_v50 = vmax.f32 %v2057_v34, 0.0  ;;  %v1950_v32 = vadd.f32 %v1949_v12, %v4547_v27 }
 0x21f   : > { %v1951_v16 = vpop.f32.mrf.mxu0 }
 0x220   : > { %v2126_v56 = vmax.f32 %v2059_v49, 0.0  ;;  %v1952_v62 = vadd.f32 %v1951_v16, %v4542_v24  ;;  %v2064_v58 = vpop.f32.mrf.mxu1  ;;  %v2161_v23 = vpack.c.bf16 %v2125_v50, %v2121_v59  ;;  %v2063_v11 = vadd.f32 %v2062_v13, %v1950_v32 }
 0x221   : > { %v1953_v33 = vpop.f32.mrf.mxu0 }
 0x222   : > { %v2162_v35 = vpack.c.bf16 %v2126_v56, %v2122_v17  ;;  %v1954_v36 = vadd.f32 %v1953_v33, %v4547_v27  ;;  %v2066_v22 = vpop.f32.mrf.mxu1  ;;  %v2065_v52 = vadd.f32 %v2064_v58, %v1952_v62  ;;  %v2129_v27 = vmax.f32 %v2063_v11, 0.0 }
 0x223   : > { %v1955_v51 = vpop.f32.mrf.mxu0 }
 0x224   : > { %v2067_v3 = vadd.f32 %v2066_v22, %v1954_v36  ;;  %v1956_v25 = vadd.f32 %v1955_v51, %v4542_v24  ;;  %2607 = vmatprep.mubr.bf16.mxu1 %v2162_v35  ;;  %v2068_v14 = vpop.f32.mrf.mxu1  ;;  %v2130_v9 = vmax.f32 %v2065_v52, 0.0  ;;  %v3625_v24 = vld [vmem:[%s4702_s7 + $0x30] sm:$0xff]  }
 0x225   : > { %2608 = vmatmul.mubr.bf16.gmra.mxu1 %v2161_v23  ;;  %3326 = vmatprep.subr.bf16.mxu0 %v3625_v24 }
 0x226   : > { %v2069_v18 = vadd.f32 %v2068_v14, %v1956_v25  ;;  %v2133_v8 = vmax.f32 %v2067_v3, 0.0  ;;  %3327 = vmatpush3.bf16.msra.mxu0 %v3625_v24 }
 0x227   : > { %3328 = vmatprep.subr.bf16.mxu0 %v3626_v54 }
 0x228   : > { %v2134_v15 = vmax.f32 %v2069_v18, 0.0  ;;  %v2165_v26 = vpack.c.bf16 %v2133_v8, %v2129_v27 }
 0x22a   : > { %v2166_v20 = vpack.c.bf16 %v2134_v15, %v2130_v9  ;;  %3329 = vmatpush3.bf16.msra.mxu0 %v3626_v54 }
 0x22b   : > { %3330 = vmatprep.subr.bf16.mxu0 %v3627_v60 }
 0x22c   : > { %2615 = vmatprep.mubr.bf16.mxu1 %v2166_v20 }
 0x22d   : > { %2616 = vmatmul.mubr.bf16.gmra.mxu1 %v2165_v26 }
 0x22e   : > { %3331 = vmatpush3.bf16.msra.mxu0 %v3627_v60 }
 0x22f   : > { %3332 = vmatprep.subr.bf16.mxu0 %v3628_v61 }
 0x232   : > { %3333 = vmatpush3.bf16.msra.mxu0 %v3628_v61 }
 0x233   : > { %3334 = vmatprep.subr.bf16.mxu0 %v3629_v63 }
 0x236   : > { %3335 = vmatpush3.bf16.msra.mxu0 %v3629_v63 }
 0x237   : > { %3336 = vmatprep.subr.bf16.mxu0 %v3630_v0 }
 0x23a   : > { %3337 = vmatpush3.bf16.msra.mxu0 %v3630_v0 }
 0x23b   : > { %3338 = vmatprep.subr.bf16.mxu0 %v3631_v53 }
 0x23e   : > { %3339 = vmatpush3.bf16.msra.mxu0 %v3631_v53 }
 0x275   : > { %v3187_v47 = vpop.f32.mrf.mxu0 }
 0x277   : > { %v3188_v55 = vpop.f32.mrf.mxu0 }
 0x278   : > { %v3189_v29 = vadd.f32 %v3188_v55, %v3187_v47 }
 0x279   : > { %v3190_v45 = vpop.f32.mrf.mxu0 }
 0x27a   : > { %v2465_v12 = vadd.f32 %v3189_v29, %v4612_v30 }
 0x27b   : > { %v3191_v46 = vpop.f32.mrf.mxu0 }
 0x27c   : > { %v3192_v34 = vadd.f32 %v3191_v46, %v3190_v45 }
 0x27d   : > { %v3193_v39 = vpop.f32.mrf.mxu0 }
 0x27e   : > { %v2468_v13 = vadd.f32 %v3192_v34, %v4612_v30 }
 0x27f   : > { %v3194_v48 = vpop.f32.mrf.mxu0 }
 0x280   : > { %v3195_v62 = vadd.f32 %v3194_v48, %v3193_v39 }
 0x281   : > { %v3196_v57 = vpop.f32.mrf.mxu0 }
 0x282   : > { %v2473_v51 = vadd.f32 %v3195_v62, %v4612_v30 }
 0x283   : > { %v3197_v37 = vpop.f32.mrf.mxu0 }
 0x284   : > { %v3198_v32 = vadd.f32 %v3197_v37, %v3196_v57 }
 0x285   : > { %v3199_v41 = vpop.f32.mrf.mxu0 }
 0x286   : > { %v2476_v25 = vadd.f32 %v3198_v32, %v4612_v30 }
 0x287   : > { %v3200_v28 = vpop.f32.mrf.mxu0 }
 0x288   : > { %v3201_v8 = vadd.f32 %v3200_v28, %v3199_v41 }
 0x289   : > { %v3202_v1 = vpop.f32.mrf.mxu0 }
 0x28a   : > { %v2481_v61 = vadd.f32 %v3201_v8, %v4612_v30 }
 0x28b   : > { %v3203_v38 = vpop.f32.mrf.mxu0 }
 0x28c   : > { %v3204_v27 = vadd.f32 %v3203_v38, %v3202_v1 }
 0x28d   : > { %v3205_v2 = vpop.f32.mrf.mxu0 }
 0x28e   : > { %v2484_v53 = vadd.f32 %v3204_v27, %v4612_v30 }
 0x28f   : > { %v3206_v4 = vpop.f32.mrf.mxu0 }
 0x290   : > { %v3207_v39 = vadd.f32 %v3206_v4, %v3205_v2 }
 0x291   : > { %v3208_v5 = vpop.f32.mrf.mxu0 }
 0x292   : > { %v2489_v29 = vadd.f32 %v3207_v39, %v4612_v30 }
 0x293   : > { %v3209_v6 = vpop.f32.mrf.mxu0 }
 0x294   : > { %v3210_v37 = vadd.f32 %v3209_v6, %v3208_v5 }
 0x295   : > { %v4605_v7 = vpop.f32.mrf.mxu0 }
 0x297   : > { %v4607_v10 = vpop.f32.mrf.mxu0 }
 0x298   : > { %v3213_v2 = vadd.f32 %v4607_v10, %v4605_v7 }
 0x299   : > { %v4614_v43 = vpop.f32.mrf.mxu0 }
 0x29b   : > { %v3215_v17 = vpop.f32.mrf.mxu0 }
 0x29c   : > { %v3216_v6 = vadd.f32 %v3215_v17, %v4614_v43 }
 0x29d   : > { %v4618_v22 = vpop.f32.mrf.mxu0 }
 0x29f   : > { %v3218_v18 = vpop.f32.mrf.mxu0 }
 0x2a0   : > { %v3219_v10 = vadd.f32 %v3218_v18, %v4618_v22 }
 0x2a1   : > { %v3220_v54 = vpop.f32.mrf.mxu0 }
 0x2a2   : > { %v2505_v8 = vadd.f32 %v3219_v10, %v4612_v30 }
 0x2a3   : > { %v3221_v45 = vpop.f32.mrf.mxu0 }
 0x2a4   : > { %v3222_v17 = vadd.f32 %v3221_v45, %v3220_v54 }
 0x2a5   : > { %v3223_v38 = vpop.f32.mrf.mxu0 }
 0x2a6   : > { %v2508_v27 = vadd.f32 %v3222_v17, %v4612_v30 }
 0x2b5   : > { %v3251_v21 = vpop.f32.mrf.mxu1 }
 0x2b7   : > { %v3252_v31 = vpop.f32.mrf.mxu1 }
 0x2b8   : > { %v3253_v42 = vadd.f32 %v3252_v31, %v3251_v21 }
 0x2b9   : > { %v3254_v44 = vpop.f32.mrf.mxu1 }
 0x2ba   : > { %v2562_v50 = vadd.f32 %v3253_v42, %v2465_v12  ;;  %v2492_v42 = vadd.f32 %v3210_v37, %v4612_v30 }
 0x2bb   : > { %v3255_v49 = vpop.f32.mrf.mxu1 }
 0x2bc   : > { %v3256_v16 = vadd.f32 %v3255_v49, %v3254_v44  ;;  %v2624_v33 = vmax.f32 %v2562_v50, 0.0  ;;  %v3224_v49 = vpop.f32.mrf.mxu0 }
 0x2bd   : > { %v3257_v56 = vpop.f32.mrf.mxu1  ;;  %v3225_v22 = vadd.f32 %v3224_v49, %v3223_v38 }
 0x2be   : > { %v2565_v58 = vadd.f32 %v3256_v16, %v2468_v13  ;;  %v3226_v62 = vpop.f32.mrf.mxu0 }
 0x2bf   : > { %v3258_v59 = vpop.f32.mrf.mxu1  ;;  %v2513_v45 = vadd.f32 %v3225_v22, %v4612_v30 }
 0x2c0   : > { %v2625_v35 = vmax.f32 %v2565_v58, 0.0  ;;  %v3259_v36 = vadd.f32 %v3258_v59, %v3257_v56  ;;  %v2497_v59 = vadd.f32 %v3213_v2, %v4612_v30 }
 0x2c1   : > { %v3260_v23 = vpop.f32.mrf.mxu1 }
 0x2c2   : > { %v2640_v52 = vpack.c.bf16 %v2625_v35, %v2624_v33  ;;  %v2570_v11 = vadd.f32 %v3259_v36, %v2473_v51  ;;  %v2500_v35 = vadd.f32 %v3216_v6, %v4612_v30  ;;  %v3227_v51 = vpop.f32.mrf.mxu0 }
 0x2c3   : > { %v3261_v3 = vpop.f32.mrf.mxu1  ;;  %v3228_v54 = vadd.f32 %v3227_v51, %v3226_v62  ;;  %v3641_v62 = vmov 0.0  }
 0x2c4   : > { %v3262_v14 = vadd.f32 %v3261_v3, %v3260_v23  ;;  %3340 = vmatprep.mubr.bf16.mxu0 %v2640_v52  ;;  %v2626_v20 = vmax.f32 %v2570_v11, 0.0  ;;  %3356 = vmatprep.subr.bf16.mxu1 %v3641_v62 }
 0x2c5   : > { %v3263_v19 = vpop.f32.mrf.mxu1  ;;  %3372 = vmatprep.mubr.msk.bf16.mxu1 %vm3642_vm1, %v3641_v62 }
 0x2c6   : > { %v2573_v9 = vadd.f32 %v3262_v14, %v2476_v25  ;;  %v3229_v14 = vpop.f32.mrf.mxu0 }
 0x2c7   : > { %v3264_v15 = vpop.f32.mrf.mxu1 }
 0x2c8   : > { %v2627_v26 = vmax.f32 %v2573_v9, 0.0  ;;  %v3265_v24 = vadd.f32 %v3264_v15, %v3263_v19 }
 0x2c9   : > { %v3266_v60 = vpop.f32.mrf.mxu1 }
 0x2ca   : > { %v2641_v63 = vpack.c.bf16 %v2627_v26, %v2626_v20  ;;  %v2578_v47 = vadd.f32 %v3265_v24, %v2481_v61  ;;  %v3230_v24 = vpop.f32.mrf.mxu0 }
 0x2cb   : > { %v3267_v0 = vpop.f32.mrf.mxu1 }
 0x2cc   : > { %v3268_v55 = vadd.f32 %v3267_v0, %v3266_v60  ;;  %3341 = vmatmul.mubr.bf16.vlgmr.msra.gmra.mxu0 %v2641_v63  ;;  %v2628_v41 = vmax.f32 %v2578_v47, 0.0  ;;  %v3232_v47 = vpop.f32.mrf.mxu0 }
 0x2cd   : > { %v3269_v46 = vpop.f32.mrf.mxu1 }
 0x2ce   : > { %v2581_v48 = vadd.f32 %v3268_v55, %v2484_v53 }
 0x2cf   : > { %v3270_v57 = vpop.f32.mrf.mxu1 }
 0x2d0   : > { %v2629_v28 = vmax.f32 %v2581_v48, 0.0  ;;  %v3271_v1 = vadd.f32 %v3270_v57, %v3269_v46  ;;  %v2516_v48 = vadd.f32 %v3228_v54, %v4612_v30 }
 0x2d1   : > { %v3272_v21 = vpop.f32.mrf.mxu1 }
 0x2d2   : > { %v2642_v31 = vpack.c.bf16 %v2629_v28, %v2628_v41  ;;  %v2586_v44 = vadd.f32 %v3271_v1, %v2489_v29  ;;  %v3233_v41 = vpop.f32.mrf.mxu0  ;;  %v3231_v1 = vadd.f32 %v3230_v24, %v3229_v14 }
 0x2d3   : > { %v3273_v34 = vpop.f32.mrf.mxu1  ;;  %v3234_v29 = vadd.f32 %v3233_v41, %v3232_v47 }
 0x2d4   : > { %v3274_v12 = vadd.f32 %v3273_v34, %v3272_v21  ;;  %3344 = vmatprep.mubr.bf16.mxu0 %v2642_v31  ;;  %v2630_v50 = vmax.f32 %v2586_v44, 0.0 }
 0x2d5   : > { %v3275_v13 = vpop.f32.mrf.mxu1  ;;  %v2524_v2 = vadd.f32 %v3234_v29, %v4612_v30 }
 0x2d6   : > { %v2589_v4 = vadd.f32 %v3274_v12, %v2492_v42  ;;  %v2521_v12 = vadd.f32 %v3231_v1, %v4612_v30  ;;  %v4643_v30 = vld [vmem:[%s4703_s8] ss:$0 sm:$0xff] }
 0x2d7   : > { %v3276_v5 = vpop.f32.mrf.mxu1 }
 0x2d8   : > { %v2631_v16 = vmax.f32 %v2589_v4, 0.0  ;;  %v3277_v56 = vadd.f32 %v3276_v5, %v3275_v13 }
 0x2d9   : > { %v3278_v58 = vpop.f32.mrf.mxu1 }
 0x2da   : > { %v2643_v32 = vpack.c.bf16 %v2631_v16, %v2630_v50  ;;  %v2594_v36 = vadd.f32 %v3277_v56, %v2497_v59 }
 0x2db   : > { %v3279_v33 = vpop.f32.mrf.mxu1 }
 0x2dc   : > { %v3280_v23 = vadd.f32 %v3279_v33, %v3278_v58  ;;  %3345 = vmatmul.mubr.bf16.gmra.mxu0 %v2643_v32  ;;  %v2632_v3 = vmax.f32 %v2594_v36, 0.0  ;;  %v2841_v58 = vld [vmem:[#allocation2] sm:$0x1] }
 0x2dd   : > { %v3281_v7 = vpop.f32.mrf.mxu1  ;;  %2844 = vperm.xlu0 %3387, %v2841_v58  }
 0x2de   : > { %v2597_v52 = vadd.f32 %v3280_v23, %v2500_v35 }
 0x2df   : > { %v3282_v43 = vpop.f32.mrf.mxu1 }
 0x2e0   : > { %v2633_v25 = vmax.f32 %v2597_v52, 0.0  ;;  %v3283_v11 = vadd.f32 %v3282_v43, %v3281_v7 }
 0x2e1   : > { %v3284_v19 = vpop.f32.mrf.mxu1 }
 0x2e2   : > { %v2644_v9 = vpack.c.bf16 %v2633_v25, %v2632_v3  ;;  %v2602_v20 = vadd.f32 %v3283_v11, %v2505_v8 }
 0x2e3   : > { %v3285_v15 = vpop.f32.mrf.mxu1 }
 0x2e4   : > { %v3286_v26 = vadd.f32 %v3285_v15, %v3284_v19  ;;  %3348 = vmatprep.mubr.bf16.mxu0 %v2644_v9  ;;  %v2634_v63 = vmax.f32 %v2602_v20, 0.0 }
 0x2e5   : > { %v3287_v60 = vpop.f32.mrf.mxu1 }
 0x2e6   : > { %v2605_v18 = vadd.f32 %v3286_v26, %v2508_v27 }
 0x2e7   : > { %v3288_v61 = vpop.f32.mrf.mxu1 }
 0x2e8   : > { %v2635_v0 = vmax.f32 %v2605_v18, 0.0  ;;  %v3289_v53 = vadd.f32 %v3288_v61, %v3287_v60 }
 0x2e9   : > { %v3290_v55 = vpop.f32.mrf.mxu1 }
 0x2ea   : > { %v2645_v46 = vpack.c.bf16 %v2635_v0, %v2634_v63  ;;  %v2610_v57 = vadd.f32 %v3289_v53, %v2513_v45 }
 0x2eb   : > { %v3291_v39 = vpop.f32.mrf.mxu1 }
 0x2ec   : > { %v3292_v37 = vadd.f32 %v3291_v39, %v3290_v55  ;;  %3349 = vmatmul.mubr.bf16.gmra.mxu0 %v2645_v46  ;;  %v2636_v31 = vmax.f32 %v2610_v57, 0.0 }
 0x2ed   : > { %v3293_v28 = vpop.f32.mrf.mxu1 }
 0x2ee   : > { %v2613_v38 = vadd.f32 %v3292_v37, %v2516_v48 }
 0x2ef   : > { %v3294_v21 = vpop.f32.mrf.mxu1 }
 0x2f0   : > { %v2637_v34 = vmax.f32 %v2613_v38, 0.0  ;;  %v3295_v42 = vadd.f32 %v3294_v21, %v3293_v28 }
 0x2f1   : > { %v3296_v44 = vpop.f32.mrf.mxu1 }
 0x2f2   : > { %v2646_v49 = vpack.c.bf16 %v2637_v34, %v2636_v31  ;;  %v2618_v4 = vadd.f32 %v3295_v42, %v2521_v12 }
 0x2f3   : > { %v3297_v13 = vpop.f32.mrf.mxu1 }
 0x2f4   : > { %v3298_v5 = vadd.f32 %v3297_v13, %v3296_v44  ;;  %3352 = vmatprep.mubr.bf16.mxu0 %v2646_v49  ;;  %v2638_v50 = vmax.f32 %v2618_v4, 0.0 }
 0x2f6   : > { %v2621_v6 = vadd.f32 %v3298_v5, %v2524_v2 }
 0x2f8   : > { %v2639_v16 = vmax.f32 %v2621_v6, 0.0 }
 0x2fa   : > { %v2647_v56 = vpack.c.bf16 %v2639_v16, %v2638_v50 }
 0x2fc   : > { %3353 = vmatmul.mubr.bf16.gmra.mxu0 %v2647_v56 }
 0x38c   : > { %v3342_v59 = vpop.f32.mrf.mxu0 }
 0x38d   : > { %v2762_v33 = vadd.f32 %v3342_v59, %v4643_v30 }
 0x38e   : > { %v2753_v32 = vpop.f32.mrf.mxu0 }
 0x38f   : > { %v2754_v36 = vadd.f32 %v4643_v30, %v2753_v32  ;;  %v2818_v7 = vmax.f32 %v2762_v33, 0.0  ;;  %v2840_v33 = vld [vmem:[%s4704_s9] sm:$0x1] }
 0x390   : > { %v3343_v35 = vpop.f32.mrf.mxu0 }
 0x391   : > { %v2765_v23 = vadd.f32 %v3343_v35, %v4643_v30  ;;  %v2816_v43 = vmax.f32 %v2754_v36, 0.0  ;;  %v2845_v35 = vpop.permute.xlu0 %2844 }
 0x392   : > { %v2756_v51 = vpop.f32.mrf.mxu0  ;;  %v2850_v36 = vrot.slane %v2845_v35, %v3998_v40 }
 0x393   : > { %v2819_v10 = vmax.f32 %v2765_v23, 0.0  ;;  %v2757_v52 = vadd.f32 %v4643_v30, %v2756_v51 }
 0x395   : > { %v4649_v17 = vpack.c.bf16 %v2819_v10, %v2818_v7  ;;  %v2817_v3 = vmax.f32 %v2757_v52, 0.0 }
 0x397   : > { %v4651_v25 = vpack.c.bf16 %v2817_v3, %v2816_v43  ;;  %v2859_v32 = vsel %vm2851_vm2, %v4649_v17, 0 }
 0x39c   : > { %v3346_v11 = vpop.f32.mrf.mxu0 }
 0x39d   : > { %v2778_v12 = vadd.f32 %v3346_v11, %v4643_v30 }
 0x39e   : > { %v2769_v14 = vpop.f32.mrf.mxu0 }
 0x39f   : > { %v2822_v2 = vmax.f32 %v2778_v12, 0.0  ;;  %v2770_v6 = vadd.f32 %v4643_v30, %v2769_v14 }
 0x3a0   : > { %v3347_v19 = vpop.f32.mrf.mxu0 }
 0x3a1   : > { %v2781_v42 = vadd.f32 %v3347_v19, %v4643_v30  ;;  %v2820_v56 = vmax.f32 %v2770_v6, 0.0 }
 0x3a2   : > { %v2772_v8 = vpop.f32.mrf.mxu0 }
 0x3a3   : > { %v2823_v49 = vmax.f32 %v2781_v42, 0.0  ;;  %v2773_v5 = vadd.f32 %v4643_v30, %v2772_v8 }
 0x3a5   : > { %v2835_v4 = vpack.c.bf16 %v2823_v49, %v2822_v2  ;;  %v2821_v50 = vmax.f32 %v2773_v5, 0.0 }
 0x3a7   : > { %v2865_v16 = vsel %vm2851_vm2, %v2835_v4, 0  ;;  %v2834_v58 = vpack.c.bf16 %v2821_v50, %v2820_v56 }
 0x3a9   : > { %v2862_v59 = vsel %vm2851_vm2, %v2834_v58, 0 }
 0x3ac   : > { %v3350_v9 = vpop.f32.mrf.mxu0 }
 0x3ad   : > { %v2794_v57 = vadd.f32 %v3350_v9, %v4643_v30 }
 0x3ae   : > { %v2785_v15 = vpop.f32.mrf.mxu0 }
 0x3af   : > { %v2826_v28 = vmax.f32 %v2794_v57, 0.0  ;;  %v2786_v21 = vadd.f32 %v4643_v30, %v2785_v15 }
 0x3b0   : > { %v3351_v27 = vpop.f32.mrf.mxu0 }
 0x3b1   : > { %v2797_v39 = vadd.f32 %v3351_v27, %v4643_v30  ;;  %v2824_v34 = vmax.f32 %v2786_v21, 0.0 }
 0x3b2   : > { %v2788_v20 = vpop.f32.mrf.mxu0 }
 0x3b3   : > { %v2827_v37 = vmax.f32 %v2797_v39, 0.0  ;;  %v2789_v38 = vadd.f32 %v4643_v30, %v2788_v20 }
 0x3b5   : > { %v2837_v1 = vpack.c.bf16 %v2827_v37, %v2826_v28  ;;  %v2825_v29 = vmax.f32 %v2789_v38, 0.0 }
 0x3b7   : > { %v2871_v31 = vsel %vm2851_vm2, %v2837_v1, 0  ;;  %v2836_v44 = vpack.c.bf16 %v2825_v29, %v2824_v34 }
 0x3b9   : > { %v2868_v13 = vsel %vm2851_vm2, %v2836_v44, 0 }
 0x3bc   : > { %v3354_v26 = vpop.f32.mrf.mxu0 }
 0x3bd   : > { %v2810_v60 = vadd.f32 %v3354_v26, %v4643_v30 }
 0x3be   : > { %v2801_v24 = vpop.f32.mrf.mxu0 }
 0x3bf   : > { %v2830_v54 = vmax.f32 %v2810_v60, 0.0  ;;  %v2802_v53 = vadd.f32 %v4643_v30, %v2801_v24 }
 0x3c0   : > { %v3355_v22 = vpop.f32.mrf.mxu0 }
 0x3c1   : > { %v2813_v18 = vadd.f32 %v3355_v22, %v4643_v30  ;;  %v2828_v46 = vmax.f32 %v2802_v53, 0.0 }
 0x3c2   : > { %v2804_v61 = vpop.f32.mrf.mxu0 }
 0x3c3   : > { %v2831_v63 = vmax.f32 %v2813_v18, 0.0  ;;  %v2805_v0 = vadd.f32 %v4643_v30, %v2804_v61  ;;  %v2856_v30 = vsel %vm2851_vm2, %v4651_v25, 0 }
 0x3c5   : > { %v2839_v47 = vpack.c.bf16 %v2831_v63, %v2830_v54  ;;  %v2829_v55 = vmax.f32 %v2805_v0, 0.0 }
 0x3c7   : > { %v2877_v45 = vsel %vm2851_vm2, %v2839_v47, 0  ;;  %v2838_v48 = vpack.c.bf16 %v2829_v55, %v2828_v46 }
 0x3c8   : > { %3357 = vmatpush3.bf16.xpose.msra.mxu1 %v2877_v45 }
 0x3c9   : > { %3358 = vmatprep.subr.bf16.mxu1 %v3641_v62  ;;  %v2874_v41 = vsel %vm2851_vm2, %v2838_v48, 0 }
 0x3d0   : > { %3359 = vmatpush3.bf16.xpose.msra.mxu1 %v2874_v41 }
 0x3d1   : > { %3360 = vmatprep.subr.bf16.mxu1 %v3641_v62 }
 0x3d8   : > { %3361 = vmatpush3.bf16.xpose.msra.mxu1 %v2871_v31 }
 0x3d9   : > { %3362 = vmatprep.subr.bf16.mxu1 %v3641_v62 }
 0x3e0   : > { %3363 = vmatpush3.bf16.xpose.msra.mxu1 %v2868_v13 }
 0x3e1   : > { %3364 = vmatprep.subr.bf16.mxu1 %v3641_v62 }
 0x3e8   : > { %3365 = vmatpush3.bf16.xpose.msra.mxu1 %v2865_v16 }
 0x3e9   : > { %3366 = vmatprep.subr.bf16.mxu1 %v3641_v62 }
 0x3f0   : > { %3367 = vmatpush3.bf16.xpose.msra.mxu1 %v2862_v59 }
 0x3f1   : > { %3368 = vmatprep.subr.bf16.mxu1 %v3641_v62 }
 0x3f8   : > { %3369 = vmatpush3.bf16.xpose.msra.mxu1 %v2859_v32 }
 0x3f9   : > { %3370 = vmatprep.subr.bf16.mxu1 %v3641_v62 }
 0x400   : > { %3371 = vmatpush3.bf16.xpose.msra.mxu1 %v2856_v30 }
 0x407   : > { %3373 = vmatmul.mubr.msk.bf16.vlgmr.msra.gmra.mxu1 %vm2851_vm2, %v2840_v33 }
 0x4c7   : > { %v2913_v62 = vpop.f32.mrf.mxu1 }
 0x4c8   : > { %v2914_v23 = vadd.f32 %v2913_v62, %v2850_v36 }
 0x4c9   : > { %v3374_v51 = vpop.f32.mrf.mxu1 }
 0x4ca   : > { %2919 = vst [vmem:[%s386_s15] sm:$0x1] %v2914_v23 }
 0x4cb   : > { %v2916_v7 = vpop.f32.mrf.mxu1 }
 0x4cd   : > { %v3375_v10 = vpop.f32.mrf.mxu1 }
 0x4ce PF: > { %s23_s19 = sadd.s32 1, %s3638_s19  }
 0x4cf   : > { %p20_p5 = scmp.ge.s32.totalorder %s23_s19, 4  }
 0x4d1   :  { %22 = sbr.rel (!%p20_p5) target bundleno = 3 (0x3), region = 94 }

</bundles_post_ra>
